<compile_context>
chip_gen: v7x
topology: tpu7x:2x2x1
jax: 0.10.0
libtpu: 0.0.40
codegen_flags: <defaults>
</compile_context>

<pallas_src>
import functools

import jax
import jax.numpy as jnp
from jax.experimental import pallas as pl
from jax.experimental.pallas import tpu as pltpu

L = 23                 # sequence length
K = 3                  # conv kernel size
C_IN = 4               # guide/target one-hot channels
C1 = 6                 # conv1 out channels per head
C2 = 16                # conv2 out channels per head
C1TOT = 3 * C1         # 18 fused conv1 channels
C2TOT = 3 * C2         # 48 fused conv2 channels
LOUT1 = L - K + 1      # 21
LOUT2 = LOUT1 - K + 1  # 19
FLAT = C2TOT * LOUT2   # 912
H1, H2, H3 = 60, 20, 1

# TB=512 keeps the per-step VMEM footprint (~8 MiB incl. double buffering)
# well under the 16/32 MiB scoped defaults and v7x's 64 MiB physical VMEM.
# On v5e/v6e (128 MiB) it could be raised to 1024-2048.
DEFAULT_BATCH_TILE = 512


def forward_kernel(g_ref, t_ref, m_ref,
                   w1g_ref, w1t_ref, w1m_ref, b1_ref,
                   w2_ref, b2_ref,
                   wfc1_ref, bfc1_ref, wfc2_ref, bfc2_ref,
                   wfc3_ref, bfc3_ref, out_ref):
    f32 = jnp.float32
    # Fused conv1 (three heads) as banded matmuls, bias + ReLU.   (TB, 378)
    y1 = jnp.dot(g_ref[...], w1g_ref[...], preferred_element_type=f32)
    y1 = y1 + jnp.dot(t_ref[...], w1t_ref[...], preferred_element_type=f32)
    y1 = y1 + jnp.dot(m_ref[...], w1m_ref[...], preferred_element_type=f32)
    y1 = jnp.maximum(y1 + b1_ref[...], 0.0)

    # Fused conv2 -> features already flattened, lane = t*48 + c. (TB, 912)
    y2 = jnp.dot(y1, w2_ref[...], preferred_element_type=f32) + b2_ref[...]
    y2 = jnp.maximum(y2, 0.0)

    # MLP head.
    h = jnp.dot(y2, wfc1_ref[...], preferred_element_type=f32) + bfc1_ref[...]
    h = jnp.maximum(h, 0.0)                                    # (TB, 60)
    h = jnp.dot(h, wfc2_ref[...], preferred_element_type=f32) + bfc2_ref[...]
    h = jnp.maximum(h, 0.0)                                    # (TB, 20)

    # fc3 with batch kept in lanes: (1,20) contracted with (TB,20) -> (1,TB).
    logits = jax.lax.dot_general(
        wfc3_ref[...], h, (((1,), (1,)), ((), ())),
        preferred_element_type=f32) + bfc3_ref[...]
    out_ref[...] = (1.0 / (1.0 + jnp.exp(-logits))).reshape(out_ref.shape)


# ---------------------------------------------------------------------------
# Wrapper: weight preparation (banded conv matrices) + pallas_call.
# ---------------------------------------------------------------------------
def _conv_taps(w):
    """(Cout, Cin, K) -> (K, Cin, Cout) float32."""
    return jnp.transpose(w.astype(jnp.float32), (2, 1, 0))


def _add_banded(base, taps, cin_total, cout_total, cin_off, cout_off, lout):
    """Place per-tap conv weights (K, cin, cout) as a banded block matrix.

    Row (t+k)*cin_total + cin_off + ci, col t*cout_total + cout_off + co gets
    taps[k, ci, co], i.e. a VALID 1-D convolution over time-major features.
    """
    k_taps, cin, cout = taps.shape
    w = base
    for t in range(lout):
        for k in range(k_taps):
            r = (t + k) * cin_total + cin_off
            c = t * cout_total + cout_off
            w = w.at[r:r + cin, c:c + cout].set(taps[k])
    return w


def _round_up(n, m):
    return ((n + m - 1) // m) * m


@functools.partial(jax.jit, static_argnames=("batch_tile",))
def sequence_cnn_net_forward(mismatches, guide, target, params,
                             batch_tile=DEFAULT_BATCH_TILE):
    """mismatches: (B, 23), guide/target: (B, 23, 4). Returns (B, 1) f32."""
    f32 = jnp.float32

    # ---- fused banded conv weights (folded at compile time under jit) ----
    w1g = _add_banded(jnp.zeros((L * C_IN, LOUT1 * C1TOT), f32),
                      _conv_taps(params["w1g"]), C_IN, C1TOT, 0, 0, LOUT1)
    w1t = _add_banded(jnp.zeros((L * C_IN, LOUT1 * C1TOT), f32),
                      _conv_taps(params["w1t"]), C_IN, C1TOT, 0, C1, LOUT1)
    w1m = _add_banded(jnp.zeros((L * 1, LOUT1 * C1TOT), f32),
                      _conv_taps(params["w1m"]), 1, C1TOT, 0, 2 * C1, LOUT1)
    b1 = jnp.tile(jnp.concatenate([params["b1g"], params["b1t"],
                                   params["b1m"]]).astype(f32), LOUT1)[None, :]

    w2 = jnp.zeros((LOUT1 * C1TOT, LOUT2 * C2TOT), f32)
    w2 = _add_banded(w2, _conv_taps(params["w2g"]), C1TOT, C2TOT, 0, 0, LOUT2)
    w2 = _add_banded(w2, _conv_taps(params["w2t"]), C1TOT, C2TOT, C1, C2, LOUT2)
    w2 = _add_banded(w2, _conv_taps(params["w2m"]), C1TOT, C2TOT,
                     2 * C1, 2 * C2, LOUT2)
    b2 = jnp.tile(jnp.concatenate([params["b2g"], params["b2t"],
                                   params["b2m"]]).astype(f32), LOUT2)[None, :]

    # fc1: PyTorch flatten index is c*19 + t; kernel lane index is t*48 + c.
    wfc1 = (params["wfc1"].astype(f32).reshape(H1, C2TOT, LOUT2)
            .transpose(2, 1, 0).reshape(FLAT, H1))
    bfc1 = params["bfc1"].astype(f32)[None, :]
    wfc2 = params["wfc2"].astype(f32).T
    bfc2 = params["bfc2"].astype(f32)[None, :]
    wfc3 = params["wfc3"].astype(f32)            # (1, 20), contracted on dim 1
    bfc3 = params["bfc3"].astype(f32)[None, :]   # (1, 1)

    # ---- batch tiling ----
    B = mismatches.shape[0]
    tb = min(batch_tile, _round_up(B, 8))
    b_pad = _round_up(B, tb)
    num_tiles = b_pad // tb

    guide2 = guide.astype(f32).reshape(B, L * C_IN)     # free bitcast reshape
    target2 = target.astype(f32).reshape(B, L * C_IN)
    mism2 = mismatches.astype(f32)
    pad = b_pad - B
    if pad:
        guide2 = jnp.pad(guide2, ((0, pad), (0, 0)))
        target2 = jnp.pad(target2, ((0, pad), (0, 0)))
        mism2 = jnp.pad(mism2, ((0, pad), (0, 0)))

    weights = [w1g, w1t, w1m, b1, w2, b2, wfc1, bfc1, wfc2, bfc2, wfc3, bfc3]

    def _tile_spec(cols):
        return pl.BlockSpec((tb, cols), lambda i: (i, 0))

    def _full_spec(arr):
        nd = arr.ndim
        return pl.BlockSpec(arr.shape, lambda i, _nd=nd: (0,) * _nd)

    in_specs = ([_tile_spec(L * C_IN), _tile_spec(L * C_IN), _tile_spec(L)]
                + [_full_spec(w) for w in weights])

    out = pl.pallas_call(
        forward_kernel,
        out_shape=jax.ShapeDtypeStruct((num_tiles, 1, tb), f32),
        grid=(num_tiles,),
        in_specs=in_specs,
        out_specs=pl.BlockSpec((1, 1, tb), lambda i: (i, 0, 0)),
        compiler_params=pltpu.CompilerParams(
            dimension_semantics=("parallel",),
            vmem_limit_bytes=32 * 1024 * 1024),
    )(guide2, target2, mism2, *weights)

    return out.reshape(b_pad, 1)[:B]


# ---------------------------------------------------------------------------
# Pure-JAX reference (mirrors the PyTorch module) for a correctness check.
# ---------------------------------------------------------------------------
def reference_forward(mismatches, guide, target, params):
    def conv1d_relu(x_ncl, w, b):
        y = jax.lax.conv_general_dilated(
            x_ncl, w, window_strides=(1,), padding="VALID",
            dimension_numbers=("NCH", "OIH", "NCH"))
        return jax.nn.relu(y + b[None, :, None])

    g = jnp.transpose(guide, (0, 2, 1))
    g = conv1d_relu(g, params["w1g"], params["b1g"])
    g = conv1d_relu(g, params["w2g"], params["b2g"])
    t = jnp.transpose(target, (0, 2, 1))
    t = conv1d_relu(t, params["w1t"], params["b1t"])
    t = conv1d_relu(t, params["w2t"], params["b2t"])
    m = mismatches[:, None, :]
    m = conv1d_relu(m, params["w1m"], params["b1m"])
    m = conv1d_relu(m, params["w2m"], params["b2m"])
    x = jnp.concatenate([g, t, m], axis=1).reshape(mismatches.shape[0], -1)
    x = jax.nn.relu(x @ params["wfc1"].T + params["bfc1"])
    x = jax.nn.relu(x @ params["wfc2"].T + params["bfc2"])
    x = x @ params["wfc3"].T + params["bfc3"]
    return jax.nn.sigmoid(x)


def init_params(key):
    """Deterministic init mimicking PyTorch's default U(-1/sqrt(fan_in), ...)."""
    def uniform(k, shape, fan_in):
        bound = 1.0 / jnp.sqrt(float(fan_in))
        return jax.random.uniform(k, shape, jnp.float32, -bound, bound)

    keys = jax.random.split(key, 18)
    p = {}
    p["w1g"] = uniform(keys[0], (C1, C_IN, K), C_IN * K)
    p["b1g"] = uniform(keys[1], (C1,), C_IN * K)
    p["w2g"] = uniform(keys[2], (C2, C1, K), C1 * K)
    p["b2g"] = uniform(keys[3], (C2,), C1 * K)
    p["w1t"] = uniform(keys[4], (C1, C_IN, K), C_IN * K)
    p["b1t"] = uniform(keys[5], (C1,), C_IN * K)
    p["w2t"] = uniform(keys[6], (C2, C1, K), C1 * K)
    p["b2t"] = uniform(keys[7], (C2,), C1 * K)
    p["w1m"] = uniform(keys[8], (C1, 1, K), 1 * K)
    p["b1m"] = uniform(keys[9], (C1,), 1 * K)
    p["w2m"] = uniform(keys[10], (C2, C1, K), C1 * K)
    p["b2m"] = uniform(keys[11], (C2,), C1 * K)
    p["wfc1"] = uniform(keys[12], (H1, FLAT), FLAT)
    p["bfc1"] = uniform(keys[13], (H1,), FLAT)
    p["wfc2"] = uniform(keys[14], (H2, H1), H1)
    p["bfc2"] = uniform(keys[15], (H2,), H1)
    p["wfc3"] = uniform(keys[16], (H3, H2), H2)
    p["bfc3"] = uniform(keys[17], (H3,), H2)
    return p


if __name__ == "__main__":
    key = jax.random.PRNGKey(0)
    k_par, k_m, k_g, k_t = jax.random.split(key, 4)

    B = 2
    params = init_params(k_par)
    mismatches = jax.random.normal(k_m, (B, L), jnp.float32)
    guide = jax.random.normal(k_g, (B, L, C_IN), jnp.float32)
    target = jax.random.normal(k_t, (B, L, C_IN), jnp.float32)

    out = sequence_cnn_net_forward(mismatches, guide, target, params)
    out = jax.block_until_ready(out)

    ref = jax.block_until_ready(reference_forward(mismatches, guide, target, params))
    assert out.shape == (B, 1), out.shape
    assert jnp.allclose(out, ref, rtol=1e-4, atol=1e-5), (out, ref)

    print("KERNEL_OK")
</pallas_src>

<mosaic_0001>
module attributes {stable_mosaic.version = 11 : i64} {
  func.func @forward_kernel(%arg0: i32, %arg1: memref<8x92xf32, #tpu.memory_space<vmem>>, %arg2: memref<8x92xf32, #tpu.memory_space<vmem>>, %arg3: memref<8x23xf32, #tpu.memory_space<vmem>>, %arg4: memref<92x378xf32, #tpu.memory_space<vmem>>, %arg5: memref<92x378xf32, #tpu.memory_space<vmem>>, %arg6: memref<23x378xf32, #tpu.memory_space<vmem>>, %arg7: memref<1x378xf32, #tpu.memory_space<vmem>>, %arg8: memref<378x912xf32, #tpu.memory_space<vmem>>, %arg9: memref<1x912xf32, #tpu.memory_space<vmem>>, %arg10: memref<912x60xf32, #tpu.memory_space<vmem>>, %arg11: memref<1x60xf32, #tpu.memory_space<vmem>>, %arg12: memref<60x20xf32, #tpu.memory_space<vmem>>, %arg13: memref<1x20xf32, #tpu.memory_space<vmem>>, %arg14: memref<1x20xf32, #tpu.memory_space<vmem>>, %arg15: memref<1x1xf32, #tpu.memory_space<vmem>>, %arg16: memref<1x1x8xf32, #tpu.memory_space<vmem>>) attributes {dimension_semantics = [#tpu.dimension_semantics<parallel>], iteration_bounds = array<i64: 1>, scalar_prefetch = 0 : i64, scratch_operands = 0 : i64, tpu.core_type = #tpu.core_type<tc>, window_params = [{transform_indices = @transform_0, window_bounds = array<i64: 8, 92>}, {transform_indices = @transform_1, window_bounds = array<i64: 8, 92>}, {transform_indices = @transform_2, window_bounds = array<i64: 8, 23>}, {pipeline_mode = #tpu.pipeline_mode<synchronous>, transform_indices = @transform_3, window_bounds = array<i64: 92, 378>}, {pipeline_mode = #tpu.pipeline_mode<synchronous>, transform_indices = @transform_4, window_bounds = array<i64: 92, 378>}, {pipeline_mode = #tpu.pipeline_mode<synchronous>, transform_indices = @transform_5, window_bounds = array<i64: 23, 378>}, {pipeline_mode = #tpu.pipeline_mode<synchronous>, transform_indices = @transform_6, window_bounds = array<i64: 1, 378>}, {pipeline_mode = #tpu.pipeline_mode<synchronous>, transform_indices = @transform_7, window_bounds = array<i64: 378, 912>}, {pipeline_mode = #tpu.pipeline_mode<synchronous>, transform_indices = @transform_8, window_bounds = array<i64: 1, 912>}, {pipeline_mode = #tpu.pipeline_mode<synchronous>, transform_indices = @transform_9, window_bounds = array<i64: 912, 60>}, {pipeline_mode = #tpu.pipeline_mode<synchronous>, transform_indices = @transform_10, window_bounds = array<i64: 1, 60>}, {pipeline_mode = #tpu.pipeline_mode<synchronous>, transform_indices = @transform_11, window_bounds = array<i64: 60, 20>}, {pipeline_mode = #tpu.pipeline_mode<synchronous>, transform_indices = @transform_12, window_bounds = array<i64: 1, 20>}, {pipeline_mode = #tpu.pipeline_mode<synchronous>, transform_indices = @transform_13, window_bounds = array<i64: 1, 20>}, {pipeline_mode = #tpu.pipeline_mode<synchronous>, transform_indices = @transform_14, window_bounds = array<i64: 1, 1>}, {transform_indices = @transform_15, window_bounds = array<i64: 1, 1, 8>}]} {
    %c0 = arith.constant 0 : index
    %c0_0 = arith.constant 0 : index
    %0 = vector.load %arg1[%c0, %c0_0] : memref<8x92xf32, #tpu.memory_space<vmem>>, vector<8x92xf32>
    %c0_1 = arith.constant 0 : index
    %c0_2 = arith.constant 0 : index
    %1 = vector.load %arg4[%c0_1, %c0_2] : memref<92x378xf32, #tpu.memory_space<vmem>>, vector<92x378xf32>
    %cst = arith.constant dense<0.000000e+00> : vector<8x378xf32>
    %2 = tpu.matmul %0, %1, %cst {dimension_numbers = #tpu.dot_dimension_numbers<[1], [0], [0], [1], [0, 0, 1, 1], [], []>} : vector<8x92xf32>, vector<92x378xf32>, vector<8x378xf32> -> vector<8x378xf32>
    %c0_3 = arith.constant 0 : index
    %c0_4 = arith.constant 0 : index
    %3 = vector.load %arg2[%c0_3, %c0_4] : memref<8x92xf32, #tpu.memory_space<vmem>>, vector<8x92xf32>
    %c0_5 = arith.constant 0 : index
    %c0_6 = arith.constant 0 : index
    %4 = vector.load %arg5[%c0_5, %c0_6] : memref<92x378xf32, #tpu.memory_space<vmem>>, vector<92x378xf32>
    %cst_7 = arith.constant dense<0.000000e+00> : vector<8x378xf32>
    %5 = tpu.matmul %3, %4, %cst_7 {dimension_numbers = #tpu.dot_dimension_numbers<[1], [0], [0], [1], [0, 0, 1, 1], [], []>} : vector<8x92xf32>, vector<92x378xf32>, vector<8x378xf32> -> vector<8x378xf32>
    %6 = arith.addf %2, %5 : vector<8x378xf32>
    %c0_8 = arith.constant 0 : index
    %c0_9 = arith.constant 0 : index
    %7 = vector.load %arg3[%c0_8, %c0_9] : memref<8x23xf32, #tpu.memory_space<vmem>>, vector<8x23xf32>
    %c0_10 = arith.constant 0 : index
    %c0_11 = arith.constant 0 : index
    %8 = vector.load %arg6[%c0_10, %c0_11] : memref<23x378xf32, #tpu.memory_space<vmem>>, vector<23x378xf32>
    %cst_12 = arith.constant dense<0.000000e+00> : vector<8x378xf32>
    %9 = tpu.matmul %7, %8, %cst_12 {dimension_numbers = #tpu.dot_dimension_numbers<[1], [0], [0], [1], [0, 0, 1, 1], [], []>} : vector<8x23xf32>, vector<23x378xf32>, vector<8x378xf32> -> vector<8x378xf32>
    %10 = arith.addf %6, %9 : vector<8x378xf32>
    %c0_13 = arith.constant 0 : index
    %c0_14 = arith.constant 0 : index
    %11 = vector.load %arg7[%c0_13, %c0_14] : memref<1x378xf32, #tpu.memory_space<vmem>>, vector<1x378xf32>
    %12 = vector.broadcast %11 : vector<1x378xf32> to vector<8x378xf32>
    %13 = arith.addf %10, %12 : vector<8x378xf32>
    %cst_15 = arith.constant 0.000000e+00 : f32
    %14 = vector.broadcast %cst_15 : f32 to vector<8x378xf32>
    %15 = arith.maximumf %13, %14 : vector<8x378xf32>
    %c0_16 = arith.constant 0 : index
    %c0_17 = arith.constant 0 : index
    %16 = vector.load %arg8[%c0_16, %c0_17] : memref<378x912xf32, #tpu.memory_space<vmem>>, vector<378x912xf32>
    %cst_18 = arith.constant dense<0.000000e+00> : vector<8x912xf32>
    %17 = tpu.matmul %15, %16, %cst_18 {dimension_numbers = #tpu.dot_dimension_numbers<[1], [0], [0], [1], [0, 0, 1, 1], [], []>} : vector<8x378xf32>, vector<378x912xf32>, vector<8x912xf32> -> vector<8x912xf32>
    %c0_19 = arith.constant 0 : index
    %c0_20 = arith.constant 0 : index
    %18 = vector.load %arg9[%c0_19, %c0_20] : memref<1x912xf32, #tpu.memory_space<vmem>>, vector<1x912xf32>
    %19 = vector.broadcast %18 : vector<1x912xf32> to vector<8x912xf32>
    %20 = arith.addf %17, %19 : vector<8x912xf32>
    %cst_21 = arith.constant 0.000000e+00 : f32
    %21 = vector.broadcast %cst_21 : f32 to vector<8x912xf32>
    %22 = arith.maximumf %20, %21 : vector<8x912xf32>
    %c0_22 = arith.constant 0 : index
    %c0_23 = arith.constant 0 : index
    %23 = vector.load %arg10[%c0_22, %c0_23] : memref<912x60xf32, #tpu.memory_space<vmem>>, vector<912x60xf32>
    %cst_24 = arith.constant dense<0.000000e+00> : vector<8x60xf32>
    %24 = tpu.matmul %22, %23, %cst_24 {dimension_numbers = #tpu.dot_dimension_numbers<[1], [0], [0], [1], [0, 0, 1, 1], [], []>} : vector<8x912xf32>, vector<912x60xf32>, vector<8x60xf32> -> vector<8x60xf32>
    %c0_25 = arith.constant 0 : index
    %c0_26 = arith.constant 0 : index
    %25 = vector.load %arg11[%c0_25, %c0_26] : memref<1x60xf32, #tpu.memory_space<vmem>>, vector<1x60xf32>
    %26 = vector.broadcast %25 : vector<1x60xf32> to vector<8x60xf32>
    %27 = arith.addf %24, %26 : vector<8x60xf32>
    %cst_27 = arith.constant 0.000000e+00 : f32
    %28 = vector.broadcast %cst_27 : f32 to vector<8x60xf32>
    %29 = arith.maximumf %27, %28 : vector<8x60xf32>
    %c0_28 = arith.constant 0 : index
    %c0_29 = arith.constant 0 : index
    %30 = vector.load %arg12[%c0_28, %c0_29] : memref<60x20xf32, #tpu.memory_space<vmem>>, vector<60x20xf32>
    %cst_30 = arith.constant dense<0.000000e+00> : vector<8x20xf32>
    %31 = tpu.matmul %29, %30, %cst_30 {dimension_numbers = #tpu.dot_dimension_numbers<[1], [0], [0], [1], [0, 0, 1, 1], [], []>} : vector<8x60xf32>, vector<60x20xf32>, vector<8x20xf32> -> vector<8x20xf32>
    %c0_31 = arith.constant 0 : index
    %c0_32 = arith.constant 0 : index
    %32 = vector.load %arg13[%c0_31, %c0_32] : memref<1x20xf32, #tpu.memory_space<vmem>>, vector<1x20xf32>
    %33 = vector.broadcast %32 : vector<1x20xf32> to vector<8x20xf32>
    %34 = arith.addf %31, %33 : vector<8x20xf32>
    %cst_33 = arith.constant 0.000000e+00 : f32
    %35 = vector.broadcast %cst_33 : f32 to vector<8x20xf32>
    %36 = arith.maximumf %34, %35 : vector<8x20xf32>
    %c0_34 = arith.constant 0 : index
    %c0_35 = arith.constant 0 : index
    %37 = vector.load %arg14[%c0_34, %c0_35] : memref<1x20xf32, #tpu.memory_space<vmem>>, vector<1x20xf32>
    %cst_36 = arith.constant dense<0.000000e+00> : vector<1x8xf32>
    %38 = tpu.matmul %37, %36, %cst_36 {dimension_numbers = #tpu.dot_dimension_numbers<[1], [1], [0], [0], [0, 0, 1, 0], [], []>} : vector<1x20xf32>, vector<8x20xf32>, vector<1x8xf32> -> vector<1x8xf32>
    %c0_37 = arith.constant 0 : index
    %c0_38 = arith.constant 0 : index
    %39 = vector.load %arg15[%c0_37, %c0_38] : memref<1x1xf32, #tpu.memory_space<vmem>>, vector<1x1xf32>
    %40 = vector.broadcast %39 : vector<1x1xf32> to vector<1x8xf32>
    %41 = arith.addf %38, %40 : vector<1x8xf32>
    %cst_39 = arith.constant 0.000000e+00 : f32
    %42 = vector.broadcast %cst_39 : f32 to vector<1x8xf32>
    %43 = arith.subf %42, %41 : vector<1x8xf32>
    %44 = math.exp %43 : vector<1x8xf32>
    %cst_40 = arith.constant 1.000000e+00 : f32
    %45 = vector.broadcast %cst_40 : f32 to vector<1x8xf32>
    %46 = arith.addf %45, %44 : vector<1x8xf32>
    %cst_41 = arith.constant 1.000000e+00 : f32
    %47 = vector.broadcast %cst_41 : f32 to vector<1x8xf32>
    %48 = arith.divf %47, %46 : vector<1x8xf32>
    %49 = vector.shape_cast %48 : vector<1x8xf32> to vector<1x1x8xf32>
    %c0_42 = arith.constant 0 : index
    %c0_43 = arith.constant 0 : index
    %c0_44 = arith.constant 0 : index
    %50 = vector.load %arg16[%c0_42, %c0_43, %c0_44] : memref<1x1x8xf32, #tpu.memory_space<vmem>>, vector<1x1x8xf32>
    tpu.vector_store %arg16[%c0_42, %c0_43, %c0_44], %49 {strides = array<i32>} : memref<1x1x8xf32, #tpu.memory_space<vmem>>, vector<1x1x8xf32>,
    return
  }
  func.func @transform_0(%arg0: i32) -> (i32, i32) {
    %c0_i32 = arith.constant 0 : i32
    %c0_i32_0 = arith.constant 0 : i32
    return %arg0, %c0_i32 : i32, i32
  }
  func.func @transform_1(%arg0: i32) -> (i32, i32) {
    %c0_i32 = arith.constant 0 : i32
    %c0_i32_0 = arith.constant 0 : i32
    return %arg0, %c0_i32 : i32, i32
  }
  func.func @transform_2(%arg0: i32) -> (i32, i32) {
    %c0_i32 = arith.constant 0 : i32
    %c0_i32_0 = arith.constant 0 : i32
    return %arg0, %c0_i32 : i32, i32
  }
  func.func @transform_3(%arg0: i32) -> (i32, i32) {
    %c0_i32 = arith.constant 0 : i32
    %c0_i32_0 = arith.constant 0 : i32
    %c0_i32_1 = arith.constant 0 : i32
    return %c0_i32, %c0_i32_0 : i32, i32
  }
  func.func @transform_4(%arg0: i32) -> (i32, i32) {
    %c0_i32 = arith.constant 0 : i32
    %c0_i32_0 = arith.constant 0 : i32
    %c0_i32_1 = arith.constant 0 : i32
    return %c0_i32, %c0_i32_0 : i32, i32
  }
  func.func @transform_5(%arg0: i32) -> (i32, i32) {
    %c0_i32 = arith.constant 0 : i32
    %c0_i32_0 = arith.constant 0 : i32
    %c0_i32_1 = arith.constant 0 : i32
    return %c0_i32, %c0_i32_0 : i32, i32
  }
  func.func @transform_6(%arg0: i32) -> (i32, i32) {
    %c0_i32 = arith.constant 0 : i32
    %c0_i32_0 = arith.constant 0 : i32
    %c0_i32_1 = arith.constant 0 : i32
    return %c0_i32, %c0_i32_0 : i32, i32
  }
  func.func @transform_7(%arg0: i32) -> (i32, i32) {
    %c0_i32 = arith.constant 0 : i32
    %c0_i32_0 = arith.constant 0 : i32
    %c0_i32_1 = arith.constant 0 : i32
    return %c0_i32, %c0_i32_0 : i32, i32
  }
  func.func @transform_8(%arg0: i32) -> (i32, i32) {
    %c0_i32 = arith.constant 0 : i32
    %c0_i32_0 = arith.constant 0 : i32
    %c0_i32_1 = arith.constant 0 : i32
    return %c0_i32, %c0_i32_0 : i32, i32
  }
  func.func @transform_9(%arg0: i32) -> (i32, i32) {
    %c0_i32 = arith.constant 0 : i32
    %c0_i32_0 = arith.constant 0 : i32
    %c0_i32_1 = arith.constant 0 : i32
    return %c0_i32, %c0_i32_0 : i32, i32
  }
  func.func @transform_10(%arg0: i32) -> (i32, i32) {
    %c0_i32 = arith.constant 0 : i32
    %c0_i32_0 = arith.constant 0 : i32
    %c0_i32_1 = arith.constant 0 : i32
    return %c0_i32, %c0_i32_0 : i32, i32
  }
  func.func @transform_11(%arg0: i32) -> (i32, i32) {
    %c0_i32 = arith.constant 0 : i32
    %c0_i32_0 = arith.constant 0 : i32
    %c0_i32_1 = arith.constant 0 : i32
    return %c0_i32, %c0_i32_0 : i32, i32
  }
  func.func @transform_12(%arg0: i32) -> (i32, i32) {
    %c0_i32 = arith.constant 0 : i32
    %c0_i32_0 = arith.constant 0 : i32
    %c0_i32_1 = arith.constant 0 : i32
    return %c0_i32, %c0_i32_0 : i32, i32
  }
  func.func @transform_13(%arg0: i32) -> (i32, i32) {
    %c0_i32 = arith.constant 0 : i32
    %c0_i32_0 = arith.constant 0 : i32
    %c0_i32_1 = arith.constant 0 : i32
    return %c0_i32, %c0_i32_0 : i32, i32
  }
  func.func @transform_14(%arg0: i32) -> (i32, i32) {
    %c0_i32 = arith.constant 0 : i32
    %c0_i32_0 = arith.constant 0 : i32
    %c0_i32_1 = arith.constant 0 : i32
    return %c0_i32, %c0_i32_0 : i32, i32
  }
  func.func @transform_15(%arg0: i32) -> (i32, i32, i32) {
    %c0_i32 = arith.constant 0 : i32
    %c0_i32_0 = arith.constant 0 : i32
    %c0_i32_1 = arith.constant 0 : i32
    return %arg0, %c0_i32, %c0_i32_0 : i32, i32, i32
  }
}

</mosaic_0001>

<bundles_post_ra>
// kernel: tile.18
= control target key start
LH: loop header
LB: loop body
LE: loop exit
PB: predicated region body
PF: predicated region fallthrough
CT: control target
= control target key end

     0   :  { %s34_s0 = inlined_call_operand.vmem [shape: f32[48], index: 0, kind: input, shape index: {}]   ;;  %s35_s1 = inlined_call_operand.vmem [shape: f32[19,48], index: 1, kind: output, shape index: {}]  }
   0x1   :  { %v4_v0 = vld [vmem:[%s34_s0] ss:$0 sm:$0xff] }
   0x2   :  { %5 = vst [vmem:[%s35_s1] sm:$0xff] %v4_v0  ;;  %10 = vst [vmem:[%s35_s1 + $0x8] sm:$0xff] %v4_v0 }
   0x3   :  { %11 = vst [vmem:[%s35_s1 + $0x10] sm:$0xff] %v4_v0 }

// kernel: tile.19
= control target key start
LH: loop header
LB: loop body
LE: loop exit
PB: predicated region body
PF: predicated region fallthrough
CT: control target
= control target key end

     0   :  { %s6_s6 = smov 3  ;;  %s9_s7 = smov 3  ;;  %vm11_vm0 = vcmask 130048   ;;  %vm26_vm1 = vcmask 1042434   ;;  %vm15_vm2 = vcmask 261120   ;;  %vm3_vm3 = vcmask 392192   ;;  %s260_s0 = inlined_call_operand.vmem [shape: f32[19,48], index: 0, kind: input, shape index: {}]   ;;  %s261_s1 = inlined_call_operand.vmem [shape: f32[1,912], index: 1, kind: output, shape index: {}]  }
   0x1   :  { %v149_v0 = vld [vmem:[%s260_s0 + $0x10] sm:$0x4]   ;;  %v146_v1 = vld [vmem:[%s260_s0 + $0xd] ss:$-8 sm:%s6_s6]   ;;  %s49_s14 = smov 3  ;;  %s22_s17 = smov 3 }
   0x2   :  { %v147_v2 = vld [vmem:[%s260_s0 + $0xd] ss:$-8 sm:%s9_s7]   ;;  %v152_v4 = vld [vmem:[%s260_s0 + $0xf] ss:$-8 sm:%s49_s14]   ;;  %s172_s18 = smov 112   ;;  %s173_s19 = smov 80  }
   0x3   :  { %v12_v3 = vsel %vm11_vm0, %v147_v2, %v146_v1  ;;  %51 = vrot.lane.b32.xlu1 %v152_v4, %s173_s19  ;;  %v148_v5 = vld [vmem:[%s260_s0 + $0xa] ss:$-8 sm:%s22_s17]   ;;  %s29_s22 = smov 3  ;;  %s57_s27 = smov 3  ;;  %v155_v11 = vld [vmem:[%s260_s0 + $0x7] sm:$0x4]  }
   0x4   :  { %13 = vrot.lane.b32.xlu0 %v12_v3, %s172_s18  ;;  %v27_v6 = vsel %vm26_vm1, %v149_v0, %v148_v5  ;;  %v150_v7 = vld [vmem:[%s260_s0 + $0x2] ss:$16 sm:%s29_s22]   ;;  %v151_v8 = vld [vmem:[%s260_s0 + $0x8] sm:$0x4]   ;;  %s65_s30 = smov 3  ;;  %s78_s6 = smov 3 }
   0x5   :  { %v34_v9 = vsel %vm26_vm1, %v151_v8, %v150_v7  ;;  %v153_v10 = vld [vmem:[%s260_s0 + $0xc] ss:$-8 sm:%s57_s27]   ;;  %v154_v13 = vld [vmem:[%s260_s0 + $0x1] ss:$16 sm:%s65_s30]   ;;  %s174_s7 = smov 96   ;;  %s175_s8 = smov 64  }
   0x6   :  { %v36_v12 = vsel %vm15_vm2, %v34_v9, %v27_v6  ;;  %v70_v14 = vsel %vm26_vm1, %v155_v11, %v154_v13  ;;  %v156_v15 = vld [vmem:[%s260_s0 + $0xe] ss:$-8 sm:%s78_s6]   ;;  %v2_v16 = vld [vmem:[%s260_s0] ss:$8 sm:$0x7]   ;;  %s86_s13 = smov 3 }
   0x7   :  { %59 = vrot.lane.b32.xlu1 %v153_v10, %s175_s8  ;;  %4 = vst.msk [vmem:[#allocation0] ss:$24 sm:$0x7] %vm3_vm3, %v2_v16   ;;  %s176_s14 = smov 48   ;;  %s177_s15 = smov 32   ;;  %vm18_vm4 = vcmask 1048448  }
   0x8   :  { %37 = vrot.lane.b32.xlu0 %v36_v12, %s174_s7  ;;  %v157_v17 = vld [vmem:[%s260_s0 + $0xb] ss:$-8 sm:%s86_s13]   ;;  %s178_s0 = smov 16   ;;  %vm53_vm5 = vcmask 1048192   ;;  %vm44_vm6 = vcmask 1048320   ;;  %vm61_vm7 = vcmask 916992  }
   0x9   :  { %vm73_vm8 = vcmask 785792   ;;  %vm82_vm9 = vcmask 654592   ;;  %vm90_vm10 = vcmask 523392  }
   0xb   :  { %80 = vrot.lane.b32.xlu1 %v156_v15, %s177_s15 }
   0xc   :  { %71 = vrot.lane.b32.xlu0 %v70_v14, %s176_s14 }
  0x10   :  { %88 = vrot.lane.b32.xlu0 %v157_v17, %s178_s0 }
  0x75   :  { %v52_v19 = vpop.permute.xlu1 %51  }
  0x76   :  { %v14_v18 = vpop.permute.xlu0 %13  }
  0x77   :  { %17 = vst.msk [vmem:[#allocation0 + $0x28] ss:$-24 sm:$0x3] %vm15_vm2, %v14_v18  }
  0x78   :  { %20 = vst.msk [vmem:[#allocation0 + $0x20] ss:$-24 sm:$0x3] %vm18_vm4, %v14_v18  }
  0x79   :  { %55 = vst.msk [vmem:[#allocation0 + $0x28] ss:$-24 sm:$0x3] %vm53_vm5, %v52_v19   ;;  %v60_v21 = vpop.permute.xlu1 %59  }
  0x7a   :  { %v38_v20 = vpop.permute.xlu0 %37  }
  0x7b   :  { %41 = vst.msk [vmem:[#allocation0 + $0x20] ss:$-24 sm:$0x3] %vm11_vm0, %v38_v20   ;;  %43 = vst.msk [vmem:[#allocation0 + $0x36] sm:$0x4] %vm11_vm0, %v38_v20  }
  0x7c   :  { %45 = vst.msk [vmem:[#allocation0] ss:$48 sm:$0x3] %vm44_vm6, %v38_v20   ;;  %47 = vst.msk [vmem:[#allocation0 + $0x16] sm:$0x4] %vm44_vm6, %v38_v20  }
  0x7d   :  { %63 = vst.msk [vmem:[#allocation0 + $0x20] ss:$-24 sm:$0x3] %vm61_vm7, %v60_v21   ;;  %v81_v23 = vpop.permute.xlu1 %80  }
  0x7e   :  { %v72_v22 = vpop.permute.xlu0 %71   ;;  %84 = vst.msk [vmem:[#allocation0 + $0x28] ss:$-24 sm:$0x3] %vm82_vm9, %v81_v23  }
  0x7f   :  { %74 = vst.msk [vmem:[#allocation0] ss:$48 sm:$0x3] %vm73_vm8, %v72_v22   ;;  %76 = vst.msk [vmem:[#allocation0 + $0x16] sm:$0x4] %vm73_vm8, %v72_v22  }
  0x82   :  { %v135_v24 = vld [vmem:[#allocation0 + $0x38] sm:$0x1]  ;;  %v89_v25 = vpop.permute.xlu0 %88  }
  0x83   :  { %164 = vst [vmem:[%s261_s1 + $0x7] sm:$0x1] %v135_v24  ;;  %92 = vst.msk [vmem:[#allocation0 + $0x20] ss:$-24 sm:$0x3] %vm90_vm10, %v89_v25  }
  0x85   :  { %v105_v29 = vld [vmem:[#allocation0 + $0x10] sm:$0x1]  ;;  %v123_v30 = vld [vmem:[#allocation0 + $0x28] sm:$0x1] }
  0x86   :  { %v96_v26 = vld [vmem:[#allocation0] sm:$0x1]  ;;  %v111_v27 = vld [vmem:[#allocation0 + $0x18] sm:$0x1]  ;;  %v129_v28 = vld [vmem:[#allocation0 + $0x30] sm:$0x1] }
  0x87   :  { %98 = vst [vmem:[%s261_s1] sm:$0x1] %v96_v26  ;;  %160 = vst [vmem:[%s261_s1 + $0x3] sm:$0x1] %v111_v27 }
  0x88   :  { %163 = vst [vmem:[%s261_s1 + $0x6] sm:$0x1] %v129_v28  ;;  %159 = vst [vmem:[%s261_s1 + $0x2] sm:$0x1] %v105_v29 }
  0x89   :  { %162 = vst [vmem:[%s261_s1 + $0x5] sm:$0x1] %v123_v30 }
  0x8a   :  { %v100_v31 = vld [vmem:[#allocation0 + $0x8] sm:$0x1]  ;;  %v117_v32 = vld [vmem:[#allocation0 + $0x20] sm:$0x1] }
  0x8b   :  { %158 = vst [vmem:[%s261_s1 + $0x1] sm:$0x1] %v100_v31  ;;  %161 = vst [vmem:[%s261_s1 + $0x4] sm:$0x1] %v117_v32 }

// kernel: tile.13
= control target key start
LH: loop header
LB: loop body
LE: loop exit
PB: predicated region body
PF: predicated region fallthrough
CT: control target
= control target key end

     0   :  { %s34_s0 = inlined_call_operand.vmem [shape: f32[18], index: 0, kind: input, shape index: {}]   ;;  %s35_s1 = inlined_call_operand.vmem [shape: f32[21,18], index: 1, kind: output, shape index: {}]  }
   0x1   :  { %v4_v0 = vld [vmem:[%s34_s0] ss:$0 sm:$0xff] }
   0x2   :  { %5 = vst [vmem:[%s35_s1] sm:$0xff] %v4_v0  ;;  %10 = vst [vmem:[%s35_s1 + $0x8] sm:$0xff] %v4_v0 }
   0x3   :  { %11 = vst [vmem:[%s35_s1 + $0x10] sm:$0xff] %v4_v0 }

// kernel: tile.14
= control target key start
LH: loop header
LB: loop body
LE: loop exit
PB: predicated region body
PF: predicated region fallthrough
CT: control target
= control target key end

     0   :  { %vm9_vm0 = vcmask 15360   ;;  %s214_s10 = smov 108   ;;  %vm22_vm1 = vcmask 31744   ;;  %s215_s19 = smov 126   ;;  %vm3_vm2 = vcmask 146432   ;;  %vm13_vm3 = vcmask 130048   ;;  %s322_s0 = inlined_call_operand.vmem [shape: f32[21,18], index: 0, kind: input, shape index: {}]   ;;  %s323_s1 = inlined_call_operand.vmem [shape: f32[1,378], index: 1, kind: output, shape index: {}]  }
   0x1   :  { %v174_v0 = vld [vmem:[%s322_s0 + $0x6] sm:$0x1]   ;;  %v170_v1 = vld [vmem:[%s322_s0 + $0x7] sm:$0x1]   ;;  %v175_v3 = vld [vmem:[%s322_s0 + $0xd] sm:$0x1]  }
   0x2   :  { %34 = vrot.lane.b32.xlu1 %v174_v0, %s214_s10  ;;  %v171_v2 = vld [vmem:[%s322_s0 + $0x7] sm:$0x1]   ;;  %v172_v5 = vld [vmem:[%s322_s0 + $0xe] sm:$0x1]   ;;  %s216_s20 = smov 106   ;;  %s217_s23 = smov 124  }
   0x3   :  { %v10_v4 = vsel %vm9_vm0, %v171_v2, %v170_v1  ;;  %v173_v6 = vld [vmem:[%s322_s0 + $0xe] sm:$0x1]   ;;  %v177_v8 = vld [vmem:[%s322_s0 + $0x5] sm:$0x1]   ;;  %v176_v9 = vld [vmem:[%s322_s0 + $0x14] sm:$0x1]  }
   0x4   :  { %11 = vrot.lane.b32.xlu0 %v10_v4, %s215_s19  ;;  %v23_v7 = vsel %vm22_vm1, %v173_v6, %v172_v5  ;;  %s218_s26 = smov 90   ;;  %v179_v10 = vld [vmem:[%s322_s0 + $0x13] sm:$0x1]   ;;  %s219_s29 = smov 104   ;;  %v2_v11 = vld [vmem:[%s322_s0] sm:$0x1]  }
   0x5   :  { %v178_v12 = vld [vmem:[%s322_s0 + $0xc] sm:$0x1]   ;;  %4 = vst.msk [vmem:[#allocation0] sm:$0x1] %vm3_vm2, %v2_v11   ;;  %s220_s5 = smov 86   ;;  %s221_s8 = smov 88  }
   0x6   :  { %40 = vrot.lane.b32.xlu1 %v175_v3, %s216_s20  ;;  %v181_v13 = vld [vmem:[%s322_s0 + $0xb] sm:$0x1]   ;;  %v180_v14 = vld [vmem:[%s322_s0 + $0x4] sm:$0x1]   ;;  %s222_s11 = smov 70   ;;  %s223_s14 = smov 72  }
   0x7   :  { %v183_v15 = vld [vmem:[%s322_s0 + $0x3] sm:$0x1]   ;;  %v182_v16 = vld [vmem:[%s322_s0 + $0x12] sm:$0x1]   ;;  %s224_s17 = smov 54   ;;  %s225_s20 = smov 68  }
   0x8   :  { %24 = vrot.lane.b32.xlu0 %v23_v7, %s217_s23  ;;  %v185_v17 = vld [vmem:[%s322_s0 + $0x11] sm:$0x1]   ;;  %v184_v18 = vld [vmem:[%s322_s0 + $0xa] sm:$0x1]   ;;  %s226_s23 = smov 50   ;;  %s229_s3 = smov 36  }
   0x9   :  { %v187_v19 = vld [vmem:[%s322_s0 + $0x9] sm:$0x1]   ;;  %v186_v20 = vld [vmem:[%s322_s0 + $0x2] sm:$0x1]   ;;  %v189_v21 = vld [vmem:[%s322_s0 + $0x1] sm:$0x1]  }
   0xa   :  { %54 = vrot.lane.b32.xlu1 %v177_v8, %s218_s26  ;;  %s227_s26 = smov 52   ;;  %v188_v22 = vld [vmem:[%s322_s0 + $0x10] sm:$0x1]   ;;  %s230_s6 = smov 18   ;;  %v191_v23 = vld [vmem:[%s322_s0 + $0xf] sm:$0x1]  }
   0xb   :  { %s231_s9 = smov 32   ;;  %v190_v24 = vld [vmem:[%s322_s0 + $0x8] sm:$0x1]   ;;  %s232_s0 = smov 14   ;;  %vm16_vm4 = vcmask 1048560   ;;  %vm36_vm5 = vcmask 1032032  }
   0xc   :  { %47 = vrot.lane.b32.xlu0 %v176_v9, %s219_s29  ;;  %s228_s29 = smov 34   ;;  %s233_s12 = smov 16   ;;  %vm26_vm6 = vcmask 113664   ;;  %vm29_vm7 = vcmask 1048544   ;;  %vm42_vm8 = vcmask 1015632   ;;  %vm56_vm9 = vcmask 884432  }
   0xd   :  { %vm49_vm10 = vcmask 999232   ;;  %vm69_vm11 = vcmask 851632   ;;  %vm62_vm12 = vcmask 868032   ;;  %vm82_vm13 = vcmask 720432  }
   0xe   :  { %67 = vrot.lane.b32.xlu1 %v179_v10, %s220_s5  ;;  %vm76_vm14 = vcmask 736832   ;;  %vm96_vm15 = vcmask 589232   ;;  %vm89_vm0 = vcmask 704032   ;;  %vm109_vm1 = vcmask 556432  }
   0xf   :  { %vm102_vm2 = vcmask 572832  }
  0x10   :  { %60 = vrot.lane.b32.xlu0 %v178_v12, %s221_s8 }
  0x12   :  { %80 = vrot.lane.b32.xlu1 %v181_v13, %s222_s11 }
  0x14   :  { %74 = vrot.lane.b32.xlu0 %v180_v14, %s223_s14 }
  0x16   :  { %94 = vrot.lane.b32.xlu1 %v183_v15, %s224_s17 }
  0x18   :  { %87 = vrot.lane.b32.xlu0 %v182_v16, %s225_s20 }
  0x1a   :  { %107 = vrot.lane.b32.xlu1 %v185_v17, %s226_s23 }
  0x1c   :  { %100 = vrot.lane.b32.xlu0 %v184_v18, %s227_s26 }
  0x1e   :  { %120 = vrot.lane.b32.xlu1 %v187_v19, %s228_s29 }
  0x20   :  { %114 = vrot.lane.b32.xlu0 %v186_v20, %s229_s3 }
  0x22   :  { %134 = vrot.lane.b32.xlu1 %v189_v21, %s230_s6 }
  0x24   :  { %127 = vrot.lane.b32.xlu0 %v188_v22, %s231_s9 }
  0x26   :  { %147 = vrot.lane.b32.xlu1 %v191_v23, %s232_s0 }
  0x28   :  { %140 = vrot.lane.b32.xlu0 %v190_v24, %s233_s12 }
  0x74   :  { %v35_v25 = vpop.permute.xlu1 %34  }
  0x76   :  { %v12_v26 = vpop.permute.xlu0 %11  }
  0x77   :  { %15 = vst.msk [vmem:[#allocation0 + $0x8] sm:$0x1] %vm13_vm3, %v12_v26   ;;  %vm122_vm3 = vcmask 425232  }
  0x78   :  { %17 = vst.msk [vmem:[#allocation0] sm:$0x1] %vm16_vm4, %v12_v26   ;;  %v41_v27 = vpop.permute.xlu1 %40   ;;  %vm116_vm4 = vcmask 441632  }
  0x79   :  { %37 = vst.msk [vmem:[#allocation0] sm:$0x1] %vm36_vm5, %v35_v25   ;;  %vm136_vm5 = vcmask 294032  }
  0x7a   :  { %v25_v28 = vpop.permute.xlu0 %24  }
  0x7b   :  { %28 = vst.msk [vmem:[#allocation0 + $0x10] sm:$0x1] %vm26_vm6, %v25_v28   ;;  %vm129_vm6 = vcmask 408832  }
  0x7c   :  { %31 = vst.msk [vmem:[#allocation0 + $0x8] sm:$0x1] %vm29_vm7, %v25_v28   ;;  %v55_v29 = vpop.permute.xlu1 %54   ;;  %vm149_vm7 = vcmask 261232  }
  0x7d   :  { %44 = vst.msk [vmem:[#allocation0 + $0x8] sm:$0x1] %vm42_vm8, %v41_v27   ;;  %vm142_vm8 = vcmask 277632  }
  0x7e   :  { %57 = vst.msk [vmem:[#allocation0] sm:$0x1] %vm56_vm9, %v55_v29   ;;  %v48_v30 = vpop.permute.xlu0 %47  }
  0x7f   :  { %51 = vst.msk [vmem:[#allocation0 + $0x10] sm:$0x1] %vm49_vm10, %v48_v30  }
  0x80   :  { %v68_v31 = vpop.permute.xlu1 %67  }
  0x81   :  { %71 = vst.msk [vmem:[#allocation0 + $0x10] sm:$0x1] %vm69_vm11, %v68_v31  }
  0x82   :  { %v61_v32 = vpop.permute.xlu0 %60  }
  0x83   :  { %64 = vst.msk [vmem:[#allocation0 + $0x8] sm:$0x1] %vm62_vm12, %v61_v32  }
  0x84   :  { %v81_v33 = vpop.permute.xlu1 %80  }
  0x85   :  { %84 = vst.msk [vmem:[#allocation0 + $0x8] sm:$0x1] %vm82_vm13, %v81_v33  }
  0x86   :  { %v75_v34 = vpop.permute.xlu0 %74  }
  0x87   :  { %77 = vst.msk [vmem:[#allocation0] sm:$0x1] %vm76_vm14, %v75_v34  }
  0x88   :  { %v95_v35 = vpop.permute.xlu1 %94  }
  0x89   :  { %97 = vst.msk [vmem:[#allocation0] sm:$0x1] %vm96_vm15, %v95_v35  }
  0x8a   :  { %v88_v36 = vpop.permute.xlu0 %87  }
  0x8b   :  { %91 = vst.msk [vmem:[#allocation0 + $0x10] sm:$0x1] %vm89_vm0, %v88_v36  }
  0x8c   :  { %v108_v37 = vpop.permute.xlu1 %107  }
  0x8d   :  { %111 = vst.msk [vmem:[#allocation0 + $0x10] sm:$0x1] %vm109_vm1, %v108_v37  }
  0x8e   :  { %v101_v38 = vpop.permute.xlu0 %100  }
  0x8f   :  { %104 = vst.msk [vmem:[#allocation0 + $0x8] sm:$0x1] %vm102_vm2, %v101_v38  }
  0x90   :  { %v121_v39 = vpop.permute.xlu1 %120  }
  0x91   :  { %124 = vst.msk [vmem:[#allocation0 + $0x8] sm:$0x1] %vm122_vm3, %v121_v39  }
  0x92   :  { %v115_v40 = vpop.permute.xlu0 %114  }
  0x93   :  { %117 = vst.msk [vmem:[#allocation0] sm:$0x1] %vm116_vm4, %v115_v40  }
  0x94   :  { %v135_v41 = vpop.permute.xlu1 %134  }
  0x95   :  { %137 = vst.msk [vmem:[#allocation0] sm:$0x1] %vm136_vm5, %v135_v41  }
  0x96   :  { %v128_v42 = vpop.permute.xlu0 %127  }
  0x97   :  { %131 = vst.msk [vmem:[#allocation0 + $0x10] sm:$0x1] %vm129_vm6, %v128_v42  }
  0x98   :  { %v148_v43 = vpop.permute.xlu1 %147  }
  0x99   :  { %151 = vst.msk [vmem:[#allocation0 + $0x10] sm:$0x1] %vm149_vm7, %v148_v43  }
  0x9a   :  { %v141_v44 = vpop.permute.xlu0 %140  }
  0x9b   :  { %144 = vst.msk [vmem:[#allocation0 + $0x8] sm:$0x1] %vm142_vm8, %v141_v44  }
  0x9c   :  { %v155_v45 = vld [vmem:[#allocation0] sm:$0x1] }
  0x9d   :  { %157 = vst [vmem:[%s323_s1] sm:$0x1] %v155_v45 }
  0xa0   :  { %v164_v46 = vld [vmem:[#allocation0 + $0x10] sm:$0x1] }
  0xa1   :  { %193 = vst [vmem:[%s323_s1 + $0x2] sm:$0x1] %v164_v46 }
  0xa2   :  { %v159_v47 = vld [vmem:[#allocation0 + $0x8] sm:$0x1] }
  0xa3   :  { %192 = vst [vmem:[%s323_s1 + $0x1] sm:$0x1] %v159_v47 }

// kernel: sequence_cnn_net_forward.1
= control target key start
LH: loop header
LB: loop body
LE: loop exit
PB: predicated region body
PF: predicated region fallthrough
CT: control target
= control target key end

     0   :  { %v3177_v0 = vmov 0.0|0.0   ;;  %vm3178_vm0 = vmmov 0   ;;  %v3179_v8 = vmov 0.0   ;;  %vm130_vm1 = vcmask 1043456   ;;  %s5210_s4 = inlined_call_operand.vmem [shape: f32[92,378], index: 4, kind: input, shape index: {}]   ;;  %s5211_s3 = inlined_call_operand.vmem [shape: f32[92,378], index: 3, kind: input, shape index: {}]   ;;  %s5212_s1 = inlined_call_operand.vmem [shape: f32[8,92], index: 1, kind: input, shape index: {}]   ;;  %s5213_s5 = inlined_call_operand.vmem [shape: f32[23,378], index: 5, kind: input, shape index: {}]   ;;  %s5214_s7 = inlined_call_operand.vmem [shape: f32[378,912], index: 7, kind: input, shape index: {}]   ;;  %s5215_s0 = inlined_call_operand.vmem [shape: f32[8,92], index: 0, kind: input, shape index: {}]   ;;  %s5216_s2 = inlined_call_operand.vmem [shape: f32[8,23], index: 2, kind: input, shape index: {}]   ;;  %s5217_s6 = inlined_call_operand.vmem [shape: f32[1,378], index: 6, kind: input, shape index: {}]   ;;  %s5218_s9 = inlined_call_operand.vmem [shape: f32[912,60], index: 9, kind: input, shape index: {}]   ;;  %s5219_s8 = inlined_call_operand.vmem [shape: f32[1,912], index: 8, kind: input, shape index: {}]   ;;  %s5220_s11 = inlined_call_operand.vmem [shape: f32[60,20], index: 11, kind: input, shape index: {}]   ;;  %s5221_s10 = inlined_call_operand.vmem [shape: f32[1,60], index: 10, kind: input, shape index: {}]   ;;  %s5222_s14 = inlined_call_operand.<no memory space> [shape: f32[1,1], index: 14, kind: input, shape index: {}]   ;;  %s5223_s12 = inlined_call_operand.vmem [shape: f32[1,20], index: 12, kind: input, shape index: {}]   ;;  %s5224_s13 = inlined_call_operand.vmem [shape: f32[1,20], index: 13, kind: input, shape index: {}]   ;;  %s5225_s15 = inlined_call_operand.vmem [shape: f32[1,1,8], index: 15, kind: output, shape index: {}]  }
   0x1   :  { %2548 = vmatprep.subr.bf16.mxu1 %v3177_v0  ;;  %v91_v1 = vld [vmem:[%s5210_s4 + $0x8] sm:$0xff]  ;;  %v94_v2 = vld [vmem:[%s5210_s4 + $0x20] sm:$0xff]  ;;  %v92_v3 = vld [vmem:[%s5210_s4 + $0x10] sm:$0xff]  ;;  %2459 = vmatprep.mubr.msk.f32.mxu1 %vm3178_vm0, %v3179_v8  ;;  %vm3180_vm2 = vmmov 1   ;;  %vm126_vm4 = vcmask 752640   ;;  %vm448_vm5 = vcmask 1046528  }
   0x2   :  { %v2522_v4 = vpack.c.bf16 %v94_v2, %v91_v1  ;;  %v95_v5 = vld [vmem:[%s5210_s4 + $0x28] sm:$0xff]  ;;  %v90_v6 = vld [vmem:[%s5210_s4] sm:$0xff]  ;;  %v93_v7 = vld [vmem:[%s5210_s4 + $0x18] sm:$0xff]  ;;  %204 = vmatprep.mubr.f32.mxu0 %v3179_v8  ;;  %vm444_vm6 = vcmask 187392   ;;  %vm1055_vm7 = vcmask 1041408   ;;  %vm1051_vm9 = vcmask 998400  }
   0x3   :  { %v2549_v9 = vpack.c.bf16 %v95_v5, %v92_v3  ;;  %v2524_v10 = vpack.c.bf16 %v93_v7, %v90_v6  ;;  %v97_v11 = vld [vmem:[%s5210_s4 + $0x38] sm:$0xff]  ;;  %v100_v12 = vld [vmem:[%s5210_s4 + $0x50] sm:$0xff]  ;;  %v98_v13 = vld [vmem:[%s5210_s4 + $0x40] sm:$0xff]  ;;  %vm1777_vm10 = vcmask 130048   ;;  %vm2077_vm11 = vcmask 490496  }
   0x4   :  { %2523 = vmatprep.subr.bf16.mxu0 %v2522_v4  ;;  %v2526_v14 = vpack.c.bf16 %v100_v12, %v97_v11  ;;  %v101_v15 = vld [vmem:[%s5210_s4 + $0x58] sm:$0xff]  ;;  %v96_v16 = vld [vmem:[%s5210_s4 + $0x30] sm:$0xff]  ;;  %v99_v17 = vld [vmem:[%s5210_s4 + $0x48] sm:$0xff]  ;;  %vm2166_vm12 = vcmask 162816   ;;  %vm2249_vm13 = vcmask 57344  }
   0x5   :  { %2550 = vmatpush3.bf16.msra.mxu1 %v2549_v9  ;;  %2525 = vmatpush1.bf16.msra.mxu0 %v2524_v10  ;;  %v2552_v18 = vpack.c.bf16 %v101_v15, %v98_v13  ;;  %v2528_v19 = vpack.c.bf16 %v99_v17, %v96_v16  ;;  %v103_v20 = vld [vmem:[%s5210_s4 + $0x68] sm:$0xff]  ;;  %v106_v21 = vld [vmem:[%s5210_s4 + $0x80] sm:$0xff]  ;;  %v104_v22 = vld [vmem:[%s5210_s4 + $0x70] sm:$0xff] }
   0x6   :  { %2551 = vmatprep.subr.bf16.mxu1 %v3177_v0  ;;  %2527 = vmatprep.subr.bf16.mxu0 %v2526_v14  ;;  %v2530_v23 = vpack.c.bf16 %v106_v21, %v103_v20  ;;  %v107_v24 = vld [vmem:[%s5210_s4 + $0x88] sm:$0xff]  ;;  %v102_v25 = vld [vmem:[%s5210_s4 + $0x60] sm:$0xff]  ;;  %v105_v26 = vld [vmem:[%s5210_s4 + $0x78] sm:$0xff] }
   0x7   :  { %v109_v27 = vld [vmem:[%s5210_s4 + $0x98] sm:$0xff]  ;;  %v112_v28 = vld [vmem:[%s5210_s4 + $0xb0] sm:$0xff]  ;;  %v2555_v29 = vpack.c.bf16 %v107_v24, %v104_v22  ;;  %v2532_v30 = vpack.c.bf16 %v105_v26, %v102_v25  ;;  %v110_v31 = vld [vmem:[%s5210_s4 + $0xa0] sm:$0xff] }
   0x8   :  { %v2534_v32 = vpack.c.bf16 %v112_v28, %v109_v27  ;;  %v113_v33 = vld [vmem:[%s5210_s4 + $0xb8] sm:$0xff]  ;;  %v108_v34 = vld [vmem:[%s5210_s4 + $0x90] sm:$0xff]  ;;  %v111_v35 = vld [vmem:[%s5210_s4 + $0xa8] sm:$0xff] }
   0x9   :  { %2553 = vmatpush3.bf16.msra.mxu1 %v2552_v18  ;;  %2529 = vmatpush1.bf16.msra.mxu0 %v2528_v19  ;;  %v115_v36 = vld [vmem:[%s5210_s4 + $0xc8] sm:$0xff]  ;;  %v118_v37 = vld [vmem:[%s5210_s4 + $0xe0] sm:$0xff]  ;;  %v2558_v38 = vpack.c.bf16 %v113_v33, %v110_v31  ;;  %v2536_v39 = vpack.c.bf16 %v111_v35, %v108_v34  ;;  %v116_v40 = vld [vmem:[%s5210_s4 + $0xd0] sm:$0xff] }
   0xa   :  { %2554 = vmatprep.subr.bf16.mxu1 %v3177_v0  ;;  %2531 = vmatprep.subr.bf16.mxu0 %v2530_v23  ;;  %v2538_v41 = vpack.c.bf16 %v118_v37, %v115_v36  ;;  %v119_v42 = vld [vmem:[%s5210_s4 + $0xe8] sm:$0xff]  ;;  %v114_v43 = vld [vmem:[%s5210_s4 + $0xc0] sm:$0xff]  ;;  %v117_v44 = vld [vmem:[%s5210_s4 + $0xd8] sm:$0xff] }
   0xb   :  { %v121_v45 = vld [vmem:[%s5210_s4 + $0xf8] sm:$0xff]  ;;  %v124_v46 = vld [vmem:[%s5210_s4 + $0x110] sm:$0xf]  ;;  %v2561_v47 = vpack.c.bf16 %v119_v42, %v116_v40  ;;  %v2540_v48 = vpack.c.bf16 %v117_v44, %v114_v43  ;;  %v122_v49 = vld [vmem:[%s5210_s4 + $0x100] sm:$0xff] }
   0xc   :  { %v2542_v50 = vpack.c.bf16 %v124_v46, %v121_v45  ;;  %v125_v51 = vld [vmem:[%s5210_s4 + $0x118] sm:$0xf]  ;;  %v120_v52 = vld [vmem:[%s5210_s4 + $0xf0] sm:$0xff]  ;;  %v123_v53 = vld [vmem:[%s5210_s4 + $0x108] sm:$0xf] }
   0xd   :  { %2556 = vmatpush3.bf16.msra.mxu1 %v2555_v29  ;;  %2533 = vmatpush1.bf16.msra.mxu0 %v2532_v30  ;;  %vm3379_vm3 = vmpackc.low %vm130_vm1, %vm3180_vm2  ;;  %v54_v55 = vld [vmem:[%s5211_s3 + $0x8] sm:$0xff]  ;;  %v57_v56 = vld [vmem:[%s5211_s3 + $0x20] sm:$0xff]  ;;  %v2564_v57 = vpack.c.bf16 %v125_v51, %v122_v49  ;;  %v2545_v58 = vpack.c.bf16 %v123_v53, %v120_v52 }
   0xe   :  { %2557 = vmatprep.subr.bf16.mxu1 %v3177_v0  ;;  %2535 = vmatprep.subr.bf16.mxu0 %v2534_v32  ;;  %v55_v59 = vld [vmem:[%s5211_s3 + $0x10] sm:$0xff]  ;;  %v2567_v60 = vpack.c.bf16 %v57_v56, %v54_v55  ;;  %v58_v61 = vld [vmem:[%s5211_s3 + $0x28] sm:$0xff]  ;;  %v53_v62 = vld [vmem:[%s5211_s3] sm:$0xff] }
   0xf   :  { %v56_v63 = vld [vmem:[%s5211_s3 + $0x18] sm:$0xff]  ;;  %v63_v2 = vld [vmem:[%s5211_s3 + $0x50] sm:$0xff]  ;;  %v89_v3 = vld [vmem:[%s5212_s1] sm:$0xff]  ;;  %v2594_v4 = vpack.c.bf16 %v58_v61, %v55_v59 }
  0x10   :  { %v60_v1 = vld [vmem:[%s5211_s3 + $0x38] sm:$0xff]  ;;  %v2569_v5 = vpack.c.bf16 %v56_v63, %v53_v62  ;;  %v61_v6 = vld [vmem:[%s5211_s3 + $0x40] sm:$0xff]  ;;  %v59_v10 = vld [vmem:[%s5211_s3 + $0x30] sm:$0xff] }
  0x11   :  { %2559 = vmatpush3.bf16.msra.mxu1 %v2558_v38  ;;  %2537 = vmatpush1.bf16.msra.mxu0 %v2536_v39  ;;  %v2571_v7 = vpack.c.bf16 %v63_v2, %v60_v1  ;;  %v64_v9 = vld [vmem:[%s5211_s3 + $0x58] sm:$0xff]  ;;  %v62_v11 = vld [vmem:[%s5211_s3 + $0x48] sm:$0xff]  ;;  %v69_v13 = vld [vmem:[%s5211_s3 + $0x80] sm:$0xff] }
  0x12   :  { %2560 = vmatprep.subr.bf16.mxu1 %v3177_v0  ;;  %2539 = vmatprep.subr.bf16.mxu0 %v2538_v41  ;;  %v66_v12 = vld [vmem:[%s5211_s3 + $0x68] sm:$0xff]  ;;  %v2597_v14 = vpack.c.bf16 %v64_v9, %v61_v6  ;;  %v2573_v15 = vpack.c.bf16 %v62_v11, %v59_v10  ;;  %v67_v16 = vld [vmem:[%s5211_s3 + $0x70] sm:$0xff]  ;;  %v65_v19 = vld [vmem:[%s5211_s3 + $0x60] sm:$0xff] }
  0x13   :  { %v2575_v17 = vpack.c.bf16 %v69_v13, %v66_v12  ;;  %v70_v18 = vld [vmem:[%s5211_s3 + $0x88] sm:$0xff]  ;;  %v68_v20 = vld [vmem:[%s5211_s3 + $0x78] sm:$0xff]  ;;  %v75_v22 = vld [vmem:[%s5211_s3 + $0xb0] sm:$0xff] }
  0x14   :  { %v72_v21 = vld [vmem:[%s5211_s3 + $0x98] sm:$0xff]  ;;  %v2600_v23 = vpack.c.bf16 %v70_v18, %v67_v16  ;;  %v2577_v24 = vpack.c.bf16 %v68_v20, %v65_v19  ;;  %v73_v25 = vld [vmem:[%s5211_s3 + $0xa0] sm:$0xff]  ;;  %v71_v28 = vld [vmem:[%s5211_s3 + $0x90] sm:$0xff] }
  0x15   :  { %2562 = vmatpush3.bf16.msra.mxu1 %v2561_v47  ;;  %2541 = vmatpush1.bf16.msra.mxu0 %v2540_v48  ;;  %v2579_v26 = vpack.c.bf16 %v75_v22, %v72_v21  ;;  %v76_v27 = vld [vmem:[%s5211_s3 + $0xb8] sm:$0xff]  ;;  %v74_v29 = vld [vmem:[%s5211_s3 + $0xa8] sm:$0xff]  ;;  %v81_v31 = vld [vmem:[%s5211_s3 + $0xe0] sm:$0xff] }
  0x16   :  { %2563 = vmatprep.subr.bf16.mxu1 %v3177_v0  ;;  %2544 = vmatprep.subr.msk.bf16.mxu0 %vm3379_vm3, %v2542_v50  ;;  %v78_v30 = vld [vmem:[%s5211_s3 + $0xc8] sm:$0xff]  ;;  %v2603_v32 = vpack.c.bf16 %v76_v27, %v73_v25  ;;  %v2581_v33 = vpack.c.bf16 %v74_v29, %v71_v28  ;;  %v79_v34 = vld [vmem:[%s5211_s3 + $0xd0] sm:$0xff]  ;;  %v77_v37 = vld [vmem:[%s5211_s3 + $0xc0] sm:$0xff] }
  0x17   :  { %v2583_v35 = vpack.c.bf16 %v81_v31, %v78_v30  ;;  %v82_v36 = vld [vmem:[%s5211_s3 + $0xe8] sm:$0xff]  ;;  %v80_v38 = vld [vmem:[%s5211_s3 + $0xd8] sm:$0xff]  ;;  %v87_v40 = vld [vmem:[%s5211_s3 + $0x110] sm:$0xf] }
  0x18   :  { %v84_v39 = vld [vmem:[%s5211_s3 + $0xf8] sm:$0xff]  ;;  %v2606_v41 = vpack.c.bf16 %v82_v36, %v79_v34  ;;  %v2585_v42 = vpack.c.bf16 %v80_v38, %v77_v37  ;;  %v85_v43 = vld [vmem:[%s5211_s3 + $0x100] sm:$0xff]  ;;  %v83_v46 = vld [vmem:[%s5211_s3 + $0xf0] sm:$0xff] }
  0x19   :  { %2566 = vmatpush3.bf16.msk.msra.mxu1 %vm3379_vm3, %v2564_v57  ;;  %2547 = vmatpush1.bf16.msk.msra.mxu0 %vm3379_vm3, %v2545_v58  ;;  %v88_v44 = vld [vmem:[%s5211_s3 + $0x118] sm:$0xf]  ;;  %v2587_v45 = vpack.c.bf16 %v87_v40, %v84_v39  ;;  %v86_v47 = vld [vmem:[%s5211_s3 + $0x108] sm:$0xf]  ;;  %v439_v49 = vld [vmem:[%s5213_s5 + $0x20] sm:$0xff] }
  0x1a   :  { %2593 = vmatprep.subr.bf16.mxu1 %v3177_v0  ;;  %2568 = vmatprep.subr.bf16.mxu0 %v2567_v60  ;;  %v436_v48 = vld [vmem:[%s5213_s5 + $0x8] sm:$0xff]  ;;  %v2609_v52 = vpack.c.bf16 %v88_v44, %v85_v43  ;;  %v2590_v53 = vpack.c.bf16 %v86_v47, %v83_v46  ;;  %v435_v56 = vld [vmem:[%s5213_s5] sm:$0xff]  ;;  %v438_v57 = vld [vmem:[%s5213_s5 + $0x18] sm:$0xff] }
  0x1b   :  { %v626_v50 = vld [vmem:[%s5214_s7 + $0x8] sm:$0xff]  ;;  %v2612_v55 = vpack.c.bf16 %v439_v49, %v436_v48  ;;  %v625_v59 = vld [vmem:[%s5214_s7] sm:$0xff]  ;;  %v2614_v1 = vpack.c.bf16 %v438_v57, %v435_v56  ;;  %v441_v10 = vld [vmem:[%s5213_s5 + $0x30] sm:$0x7f] }
  0x1c   :  { %2460 = vmatmul.mubr.msk.f32.vlgmr.msra.gmra.mrb[0].mxu1 %vm126_vm4, %v89_v3  ;;  %2257 = vmatmul.mubr.msk.f32.vlgmr.msra.gmra.mrb[0].mxu0 %vm126_vm4, %v89_v3  ;;  %v634_v51 = vld [vmem:[%s5214_s7 + $0x48] sm:$0xff]  ;;  %v633_v60 = vld [vmem:[%s5214_s7 + $0x40] sm:$0xff]  ;;  %v442_v3 = vld [vmem:[%s5213_s5 + $0x38] sm:$0x7f] }
  0x1d   :  { %2595 = vmatpush3.bf16.msra.mxu1 %v2594_v4  ;;  %2570 = vmatpush1.bf16.msra.mxu0 %v2569_v5  ;;  %v2619_v58 = vpack.c.bf16 %v634_v51, %v626_v50  ;;  %v642_v61 = vld [vmem:[%s5214_s7 + $0x88] sm:$0xff]  ;;  %v52_v63 = vld [vmem:[%s5215_s0] sm:$0xff]  ;;  %v2621_v2 = vpack.c.bf16 %v633_v60, %v625_v59  ;;  %v437_v5 = vld [vmem:[%s5213_s5 + $0x10] sm:$0xff] }
  0x1e   :  { %2596 = vmatprep.subr.bf16.mxu1 %v3177_v0  ;;  %2572 = vmatprep.subr.bf16.mxu0 %v2571_v7  ;;  %v650_v62 = vld [vmem:[%s5214_s7 + $0xc8] sm:$0xff]  ;;  %v641_v7 = vld [vmem:[%s5214_s7 + $0x80] sm:$0xff]  ;;  %v627_v18 = vld [vmem:[%s5214_s7 + $0x10] sm:$0xff] }
  0x1f   :  { %2486 = vmatprep.mubr.msk.f32.mxu1 %vm3178_vm0, %v3179_v8  ;;  %357 = vmatprep.mubr.f32.mxu0 %v3179_v8  ;;  %v2623_v4 = vpack.c.bf16 %v650_v62, %v642_v61  ;;  %v440_v6 = vld [vmem:[%s5213_s5 + $0x28] sm:$0xff]  ;;  %v649_v9 = vld [vmem:[%s5214_s7 + $0xc0] sm:$0xff]  ;;  %v635_v19 = vld [vmem:[%s5214_s7 + $0x50] sm:$0xff] }
  0x20   :  { %v658_v11 = vld [vmem:[%s5214_s7 + $0x108] sm:$0xff]  ;;  %v434_v13 = vld [vmem:[%s5216_s2] sm:$0xff]  ;;  %v2625_v16 = vpack.c.bf16 %v649_v9, %v641_v7  ;;  %v644_v21 = vld [vmem:[%s5214_s7 + $0x98] sm:$0xff]  ;;  %v2719_v29 = vpack.c.bf16 %v635_v19, %v627_v18 }
  0x21   :  { %2598 = vmatpush3.bf16.msra.mxu1 %v2597_v14  ;;  %2574 = vmatpush1.bf16.msra.mxu0 %v2573_v15  ;;  %v666_v12 = vld [vmem:[%s5214_s7 + $0x148] sm:$0xff]  ;;  %v2617_v14 = vpack.c.bf16 %v440_v6, %v437_v5  ;;  %v628_v15 = vld [vmem:[%s5214_s7 + $0x18] sm:$0xff]  ;;  %v657_v22 = vld [vmem:[%s5214_s7 + $0x100] sm:$0xff] }
  0x22   :  { %2599 = vmatprep.subr.bf16.mxu1 %v3177_v0  ;;  %2576 = vmatprep.subr.bf16.mxu0 %v2575_v17  ;;  %v636_v17 = vld [vmem:[%s5214_s7 + $0x58] sm:$0xff]  ;;  %v2627_v20 = vpack.c.bf16 %v666_v12, %v658_v11  ;;  %v674_v25 = vld [vmem:[%s5214_s7 + $0x188] sm:$0xff]  ;;  %v443_v27 = vld [vmem:[%s5213_s5 + $0x40] sm:$0x7f] }
  0x23   :  { %v2717_v28 = vpack.c.bf16 %v636_v17, %v628_v15  ;;  %v643_v30 = vld [vmem:[%s5214_s7 + $0x90] sm:$0xff]  ;;  %v660_v34 = vld [vmem:[%s5214_s7 + $0x118] sm:$0xff]  ;;  %v673_v36 = vld [vmem:[%s5214_s7 + $0x180] sm:$0xff] }
  0x24   :  { %v651_v31 = vld [vmem:[%s5214_s7 + $0xd0] sm:$0xff]  ;;  %v681_v37 = vld [vmem:[%s5214_s7 + $0x1c0] sm:$0xff]  ;;  %v668_v38 = vld [vmem:[%s5214_s7 + $0x158] sm:$0xff] }
  0x25   :  { %2601 = vmatpush3.bf16.msra.mxu1 %v2600_v23  ;;  %2578 = vmatpush1.bf16.msra.mxu0 %v2577_v24  ;;  %v665_v23 = vld [vmem:[%s5214_s7 + $0x140] sm:$0xff]  ;;  %v652_v24 = vld [vmem:[%s5214_s7 + $0xd8] sm:$0xff]  ;;  %v690_v39 = vld [vmem:[%s5214_s7 + $0x208] sm:$0xff]  ;;  %v2633_v44 = vpack.c.bf16 %v681_v37, %v673_v36 }
  0x26   :  { %2602 = vmatprep.subr.bf16.mxu1 %v3177_v0  ;;  %2580 = vmatprep.subr.bf16.mxu0 %v2579_v26  ;;  %v682_v26 = vld [vmem:[%s5214_s7 + $0x1c8] sm:$0xff]  ;;  %v667_v43 = vld [vmem:[%s5214_s7 + $0x150] sm:$0xff]  ;;  %v676_v46 = vld [vmem:[%s5214_s7 + $0x198] sm:$0xff] }
  0x27   :  { %v698_v40 = vld [vmem:[%s5214_s7 + $0x248] sm:$0xff]  ;;  %v689_v48 = vld [vmem:[%s5214_s7 + $0x200] sm:$0xff]  ;;  %v684_v50 = vld [vmem:[%s5214_s7 + $0x1d8] sm:$0xff] }
  0x28   :  { %v2635_v47 = vpack.c.bf16 %v698_v40, %v690_v39  ;;  %v697_v49 = vld [vmem:[%s5214_s7 + $0x240] sm:$0xff]  ;;  %v706_v51 = vld [vmem:[%s5214_s7 + $0x288] sm:$0xff]  ;;  %v683_v56 = vld [vmem:[%s5214_s7 + $0x1d0] sm:$0xff] }
  0x29   :  { %2604 = vmatpush3.bf16.msra.mxu1 %v2603_v32  ;;  %2582 = vmatpush1.bf16.msra.mxu0 %v2581_v33  ;;  %v2629_v32 = vpack.c.bf16 %v665_v23, %v657_v22  ;;  %v2721_v33 = vpack.c.bf16 %v652_v24, %v644_v21  ;;  %v2637_v57 = vpack.c.bf16 %v697_v49, %v689_v48  ;;  %v692_v59 = vld [vmem:[%s5214_s7 + $0x218] sm:$0xff]  ;;  %v705_v61 = vld [vmem:[%s5214_s7 + $0x280] sm:$0xff]  ;;  %v699_v7 = vld [vmem:[%s5214_s7 + $0x250] sm:$0xff] }
  0x2a   :  { %2605 = vmatprep.subr.bf16.mxu1 %v3177_v0  ;;  %2584 = vmatprep.subr.bf16.mxu0 %v2583_v35  ;;  %v2631_v35 = vpack.c.bf16 %v682_v26, %v674_v25  ;;  %v713_v62 = vld [vmem:[%s5214_s7 + $0x2c0] sm:$0xff]  ;;  %v708_v12 = vld [vmem:[%s5214_s7 + $0x298] sm:$0xff]  ;;  %v707_v17 = vld [vmem:[%s5214_s7 + $0x290] sm:$0xff] }
  0x2b   :  { %v2641_v5 = vpack.c.bf16 %v713_v62, %v705_v61  ;;  %v729_v11 = vld [vmem:[%s5214_s7 + $0x340] sm:$0xff]  ;;  %v715_v18 = vld [vmem:[%s5214_s7 + $0x2d0] sm:$0xff]  ;;  %v724_v19 = vld [vmem:[%s5214_s7 + $0x318] sm:$0xff] }
  0x2c   :  { %v2739_v21 = vpack.c.bf16 %v715_v18, %v707_v17  ;;  %v723_v23 = vld [vmem:[%s5214_s7 + $0x310] sm:$0xff]  ;;  %v738_v26 = vld [vmem:[%s5214_s7 + $0x388] sm:$0xff]  ;;  %v756_v40 = vld [vmem:[%s5214_s7 + $0x418] sm:$0xff] }
  0x2d   :  { %2607 = vmatpush3.bf16.msra.mxu1 %v2606_v41  ;;  %2586 = vmatpush1.bf16.msra.mxu0 %v2585_v42  ;;  %v2723_v41 = vpack.c.bf16 %v651_v31, %v643_v30  ;;  %v659_v42 = vld [vmem:[%s5214_s7 + $0x110] sm:$0xff]  ;;  %v748_v30 = vld [vmem:[%s5214_s7 + $0x3d8] sm:$0xff]  ;;  %v737_v31 = vld [vmem:[%s5214_s7 + $0x380] sm:$0xff] }
  0x2e   :  { %2608 = vmatprep.subr.bf16.mxu1 %v3177_v0  ;;  %2589 = vmatprep.subr.msk.bf16.mxu0 %vm3379_vm3, %v2587_v45  ;;  %v2725_v45 = vpack.c.bf16 %v668_v38, %v660_v34  ;;  %v731_v24 = vld [vmem:[%s5214_s7 + $0x350] sm:$0xff]  ;;  %v754_v37 = vld [vmem:[%s5214_s7 + $0x408] sm:$0xff]  ;;  %v801_v18 = vld [vmem:[%s5214_s7 + $0x580] sm:$0xff] }
  0x2f   :  { %v2743_v25 = vpack.c.bf16 %v731_v24, %v723_v23  ;;  %v747_v36 = vld [vmem:[%s5214_s7 + $0x3d0] sm:$0xff]  ;;  %v762_v39 = vld [vmem:[%s5214_s7 + $0x448] sm:$0xff]  ;;  %vm4157_vm8 = vmpackc.low %vm1055_vm7, %vm3180_vm2 }
  0x30   :  { %v763_v48 = vld [vmem:[%s5214_s7 + $0x450] sm:$0xff]  ;;  %v770_v49 = vld [vmem:[%s5214_s7 + $0x488] sm:$0xff] }
  0x31   :  { %2611 = vmatpush3.bf16.msk.msra.mxu1 %vm3379_vm3, %v2609_v52  ;;  %2592 = vmatpush1.bf16.msk.msra.mxu0 %vm3379_vm3, %v2590_v53  ;;  %v714_v52 = vld [vmem:[%s5214_s7 + $0x2c8] sm:$0xff]  ;;  %v2727_v53 = vpack.c.bf16 %v667_v43, %v659_v42  ;;  %v2651_v42 = vpack.c.bf16 %v762_v39, %v754_v37  ;;  %v836_v39 = vld [vmem:[%s5214_s7 + $0x698] sm:$0xff] }
  0x32   :  { %2613 = vmatprep.subr.bf16.mxu1 %v2612_v55  ;;  %2620 = vmatprep.subr.bf16.mxu0 %v2619_v58  ;;  %v675_v55 = vld [vmem:[%s5214_s7 + $0x190] sm:$0xff]  ;;  %v2729_v58 = vpack.c.bf16 %v684_v50, %v676_v46  ;;  %v2639_v60 = vpack.c.bf16 %v714_v52, %v706_v51  ;;  %v778_v50 = vld [vmem:[%s5214_s7 + $0x4c8] sm:$0xff] }
  0x33   :  { %v755_v46 = vld [vmem:[%s5214_s7 + $0x410] sm:$0xff]  ;;  %v2655_v52 = vpack.c.bf16 %v778_v50, %v770_v49  ;;  %v786_v62 = vld [vmem:[%s5214_s7 + $0x508] sm:$0xff] }
  0x34   :  { %2487 = vmatmul.mubr.msk.f32.vlgmr.msra.gmra.mrb[2].mxu1 %vm126_vm4, %v52_v63  ;;  %2262 = vmatmul.mubr.msk.f32.vlgmr.msra.gmra.mrb[0].mxu0 %vm126_vm4, %v52_v63  ;;  %v700_v63 = vld [vmem:[%s5214_s7 + $0x258] sm:$0xff]  ;;  %v2751_v51 = vpack.c.bf16 %v763_v48, %v755_v46  ;;  %v818_v23 = vld [vmem:[%s5214_s7 + $0x608] sm:$0xff]  ;;  %v835_v46 = vld [vmem:[%s5214_s7 + $0x690] sm:$0xff] }
  0x35   :  { %2615 = vmatpush1.bf16.msra.mxu1 %v2614_v1  ;;  %522 = vmatprep.mubr.f32.mxu1 %v3179_v8  ;;  %v722_v1 = vld [vmem:[%s5214_s7 + $0x308] sm:$0xff]  ;;  %v2733_v6 = vpack.c.bf16 %v700_v63, %v692_v59  ;;  %v771_v59 = vld [vmem:[%s5214_s7 + $0x490] sm:$0xff] }
  0x36   :  { %2265 = vmatprep.subr.msk.mxu1 %vm448_vm5, %v442_v3  ;;  %2622 = vmatpush1.bf16.msra.mxu0 %v2621_v2  ;;  %v730_v2 = vld [vmem:[%s5214_s7 + $0x348] sm:$0xff]  ;;  %v2731_v3 = vpack.c.bf16 %v683_v56, %v675_v55  ;;  %v780_v55 = vld [vmem:[%s5214_s7 + $0x4d8] sm:$0xff]  ;;  %v769_v56 = vld [vmem:[%s5214_s7 + $0x480] sm:$0xff] }
  0x37   :  { %2624 = vmatprep.subr.bf16.mxu0 %v2623_v4  ;;  %v691_v4 = vld [vmem:[%s5214_s7 + $0x210] sm:$0xff]  ;;  %v2643_v9 = vpack.c.bf16 %v730_v2, %v722_v1  ;;  %v794_v63 = vld [vmem:[%s5214_s7 + $0x548] sm:$0xff]  ;;  %v788_v1 = vld [vmem:[%s5214_s7 + $0x518] sm:$0xff] }
  0x38   :  { %v826_v24 = vld [vmem:[%s5214_s7 + $0x648] sm:$0xff] }
  0x39   :  { %2266 = vmatpush1.msk.msra.mxu1 %vm448_vm5, %v441_v10  ;;  %v721_v10 = vld [vmem:[%s5214_s7 + $0x300] sm:$0xff]  ;;  %v834_v37 = vld [vmem:[%s5214_s7 + $0x688] sm:$0xff] }
  0x3a   :  { %2267 = vmatmul.mubr.msk.f32.vlgmr.msra.gmra.mrb[4].mxu1 %vm444_vm6, %v434_v13  ;;  %2616 = vmatprep.subr.bf16.mxu1 %v3177_v0  ;;  %v2645_v15 = vpack.c.bf16 %v729_v11, %v721_v10  ;;  %v795_v10 = vld [vmem:[%s5214_s7 + $0x550] sm:$0xff]  ;;  %v802_v11 = vld [vmem:[%s5214_s7 + $0x588] sm:$0xff] }
  0x3b   :  { %2618 = vmatpush3.bf16.msra.mxu1 %v2617_v14  ;;  %2495 = vmatprep.mubr.msk.f32.mxu1 %vm3178_vm0, %v3179_v8  ;;  %v2735_v14 = vpack.c.bf16 %v699_v7, %v691_v4  ;;  %v796_v4 = vld [vmem:[%s5214_s7 + $0x558] sm:$0xff]  ;;  %v850_v49 = vld [vmem:[%s5214_s7 + $0x708] sm:$0xff] }
  0x3c   :  { %2493 = vmatprep.subr.mxu1 %v3179_v8  ;;  %2626 = vmatpush1.bf16.msra.mxu0 %v2625_v16  ;;  %v2757_v7 = vpack.c.bf16 %v796_v4, %v788_v1  ;;  %v858_v50 = vld [vmem:[%s5214_s7 + $0x748] sm:$0xff]  ;;  %v868_v1 = vld [vmem:[%s5214_s7 + $0x798] sm:$0xff]  ;;  %v865_v4 = vld [vmem:[%s5214_s7 + $0x780] sm:$0xff] }
  0x3d   :  { %2628 = vmatprep.subr.bf16.mxu0 %v2627_v20  ;;  %v732_v20 = vld [vmem:[%s5214_s7 + $0x358] sm:$0xff] }
  0x3e   :  { %v2741_v22 = vpack.c.bf16 %v732_v20, %v724_v19  ;;  %v809_v19 = vld [vmem:[%s5214_s7 + $0x5c0] sm:$0xff]  ;;  %v803_v20 = vld [vmem:[%s5214_s7 + $0x590] sm:$0xff] }
  0x3f   :  { %2494 = vmatpush3.msk.msra.mxu1 %vm448_vm5, %v443_v27  ;;  %v746_v27 = vld [vmem:[%s5214_s7 + $0x3c8] sm:$0xff] }
  0x40   :  { %2496 = vmatmul.mubr.msk.f32.vlgmr.msra.gmra.mrb[6].mxu1 %vm444_vm6, %v434_v13  ;;  %2718 = vmatprep.subr.bf16.mxu1 %v2717_v28  ;;  %v716_v13 = vld [vmem:[%s5214_s7 + $0x2d8] sm:$0xff] }
  0x41   :  { %2720 = vmatpush1.bf16.msra.mxu1 %v2719_v29  ;;  %2630 = vmatpush1.bf16.msra.mxu0 %v2629_v32  ;;  %v2737_v16 = vpack.c.bf16 %v716_v13, %v708_v12  ;;  %v740_v28 = vld [vmem:[%s5214_s7 + $0x398] sm:$0xff]  ;;  %v2647_v29 = vpack.c.bf16 %v746_v27, %v738_v26  ;;  %v745_v32 = vld [vmem:[%s5214_s7 + $0x3c0] sm:$0xff]  ;;  %v810_v12 = vld [vmem:[%s5214_s7 + $0x5c8] sm:$0xff]  ;;  %v2665_v27 = vpack.c.bf16 %v809_v19, %v801_v18 }
  0x42   :  { %2722 = vmatprep.subr.bf16.mxu1 %v2721_v33  ;;  %2632 = vmatprep.subr.bf16.mxu0 %v2631_v35  ;;  %v2745_v33 = vpack.c.bf16 %v748_v30, %v740_v28  ;;  %v2649_v34 = vpack.c.bf16 %v745_v32, %v737_v31  ;;  %v739_v35 = vld [vmem:[%s5214_s7 + $0x390] sm:$0xff]  ;;  %v804_v13 = vld [vmem:[%s5214_s7 + $0x598] sm:$0xff]  ;;  %v2663_v17 = vpack.c.bf16 %v810_v12, %v802_v11  ;;  %v817_v30 = vld [vmem:[%s5214_s7 + $0x600] sm:$0xff] }
  0x43   :  { %v2747_v38 = vpack.c.bf16 %v747_v36, %v739_v35  ;;  %v828_v26 = vld [vmem:[%s5214_s7 + $0x658] sm:$0xff]  ;;  %v825_v31 = vld [vmem:[%s5214_s7 + $0x640] sm:$0xff]  ;;  %v882_v12 = vld [vmem:[%s5214_s7 + $0x808] sm:$0xff] }
  0x44   :  { %v2669_v35 = vpack.c.bf16 %v825_v31, %v817_v30 }
  0x45   :  { %2724 = vmatpush1.bf16.msra.mxu1 %v2723_v41  ;;  %2634 = vmatpush1.bf16.msra.mxu0 %v2633_v44  ;;  %v764_v41 = vld [vmem:[%s5214_s7 + $0x458] sm:$0xff]  ;;  %v753_v44 = vld [vmem:[%s5214_s7 + $0x400] sm:$0xff] }
  0x46   :  { %2726 = vmatprep.subr.bf16.mxu1 %v2725_v45  ;;  %2636 = vmatprep.subr.bf16.mxu0 %v2635_v47  ;;  %v2749_v43 = vpack.c.bf16 %v764_v41, %v756_v40  ;;  %v761_v45 = vld [vmem:[%s5214_s7 + $0x440] sm:$0xff]  ;;  %v844_v41 = vld [vmem:[%s5214_s7 + $0x6d8] sm:$0xff] }
  0x47   :  { %v2653_v47 = vpack.c.bf16 %v761_v45, %v753_v44  ;;  %v2769_v44 = vpack.c.bf16 %v844_v41, %v836_v39  ;;  %v883_v39 = vld [vmem:[%s5214_s7 + $0x810] sm:$0xff]  ;;  %v898_v41 = vld [vmem:[%s5214_s7 + $0x888] sm:$0xff] }
  0x49   :  { %2728 = vmatpush1.bf16.msra.mxu1 %v2727_v53  ;;  %2638 = vmatpush1.bf16.msra.mxu0 %v2637_v57  ;;  %v772_v53 = vld [vmem:[%s5214_s7 + $0x498] sm:$0xff] }
  0x4a   :  { %2730 = vmatprep.subr.bf16.mxu1 %v2729_v58  ;;  %2640 = vmatprep.subr.bf16.mxu0 %v2639_v60  ;;  %v2753_v57 = vpack.c.bf16 %v780_v55, %v772_v53  ;;  %v777_v58 = vld [vmem:[%s5214_s7 + $0x4c0] sm:$0xff]  ;;  %v779_v60 = vld [vmem:[%s5214_s7 + $0x4d0] sm:$0xff]  ;;  %v860_v53 = vld [vmem:[%s5214_s7 + $0x758] sm:$0xff] }
  0x4b   :  { %v2657_v61 = vpack.c.bf16 %v777_v58, %v769_v56  ;;  %v2755_v2 = vpack.c.bf16 %v779_v60, %v771_v59  ;;  %v849_v55 = vld [vmem:[%s5214_s7 + $0x700] sm:$0xff]  ;;  %v851_v59 = vld [vmem:[%s5214_s7 + $0x710] sm:$0xff] }
  0x4c   :  { %v857_v56 = vld [vmem:[%s5214_s7 + $0x740] sm:$0xff]  ;;  %v859_v60 = vld [vmem:[%s5214_s7 + $0x750] sm:$0xff] }
  0x4d   :  { %2732 = vmatpush1.bf16.msra.mxu1 %v2731_v3  ;;  %2642 = vmatpush1.bf16.msra.mxu0 %v2641_v5  ;;  %v2659_v3 = vpack.c.bf16 %v794_v63, %v786_v62  ;;  %v785_v5 = vld [vmem:[%s5214_s7 + $0x500] sm:$0xff]  ;;  %v2677_v58 = vpack.c.bf16 %v857_v56, %v849_v55  ;;  %v866_v62 = vld [vmem:[%s5214_s7 + $0x788] sm:$0xff] }
  0x4e   :  { %2734 = vmatprep.subr.bf16.mxu1 %v2733_v6  ;;  %2644 = vmatprep.subr.bf16.mxu0 %v2643_v9  ;;  %v793_v6 = vld [vmem:[%s5214_s7 + $0x540] sm:$0xff]  ;;  %v787_v9 = vld [vmem:[%s5214_s7 + $0x510] sm:$0xff]  ;;  %v874_v63 = vld [vmem:[%s5214_s7 + $0x7c8] sm:$0xff] }
  0x51   :  { %2736 = vmatpush1.bf16.msra.mxu1 %v2735_v14  ;;  %2646 = vmatpush1.bf16.msra.mxu0 %v2645_v15  ;;  %v812_v14 = vld [vmem:[%s5214_s7 + $0x5d8] sm:$0xff]  ;;  %v2661_v15 = vpack.c.bf16 %v793_v6, %v785_v5  ;;  %v873_v5 = vld [vmem:[%s5214_s7 + $0x7c0] sm:$0xff] }
  0x52   :  { %2738 = vmatprep.subr.bf16.mxu1 %v2737_v16  ;;  %2648 = vmatprep.subr.bf16.mxu0 %v2647_v29  ;;  %v2759_v16 = vpack.c.bf16 %v795_v10, %v787_v9  ;;  %v2667_v29 = vpack.c.bf16 %v826_v24, %v818_v23  ;;  %v867_v9 = vld [vmem:[%s5214_s7 + $0x790] sm:$0xff] }
  0x53   :  { %v875_v10 = vld [vmem:[%s5214_s7 + $0x7d0] sm:$0xff] }
  0x54   :  { %v2779_v11 = vpack.c.bf16 %v875_v10, %v867_v9  ;;  %v923_v9 = vld [vmem:[%s5214_s7 + $0x950] sm:$0xff]  ;;  %v930_v10 = vld [vmem:[%s5214_s7 + $0x988] sm:$0xff] }
  0x55   :  { %2740 = vmatpush1.bf16.msra.mxu1 %v2739_v21  ;;  %2650 = vmatpush1.bf16.msra.mxu0 %v2649_v34  ;;  %v2761_v21 = vpack.c.bf16 %v812_v14, %v804_v13  ;;  %v827_v34 = vld [vmem:[%s5214_s7 + $0x650] sm:$0xff]  ;;  %v890_v13 = vld [vmem:[%s5214_s7 + $0x848] sm:$0xff]  ;;  %v884_v14 = vld [vmem:[%s5214_s7 + $0x818] sm:$0xff] }
  0x56   :  { %2742 = vmatprep.subr.bf16.mxu1 %v2741_v22  ;;  %2652 = vmatprep.subr.bf16.mxu0 %v2651_v42  ;;  %v811_v22 = vld [vmem:[%s5214_s7 + $0x5d0] sm:$0xff]  ;;  %v833_v42 = vld [vmem:[%s5214_s7 + $0x680] sm:$0xff] }
  0x57   :  { %v2763_v28 = vpack.c.bf16 %v811_v22, %v803_v20  ;;  %v604_v20 = vlaneseq }
  0x59   :  { %2744 = vmatpush1.bf16.msra.mxu1 %v2743_v25  ;;  %2654 = vmatpush1.bf16.msra.mxu0 %v2653_v47  ;;  %v820_v25 = vld [vmem:[%s5214_s7 + $0x618] sm:$0xff]  ;;  %v843_v47 = vld [vmem:[%s5214_s7 + $0x6d0] sm:$0xff] }
  0x5a   :  { %2746 = vmatprep.subr.bf16.mxu1 %v2745_v33  ;;  %2656 = vmatprep.subr.bf16.mxu0 %v2655_v52  ;;  %v2765_v32 = vpack.c.bf16 %v828_v26, %v820_v25  ;;  %v819_v33 = vld [vmem:[%s5214_s7 + $0x610] sm:$0xff]  ;;  %v2771_v48 = vpack.c.bf16 %v843_v47, %v835_v46  ;;  %v2675_v52 = vpack.c.bf16 %v858_v50, %v850_v49  ;;  %v897_v50 = vld [vmem:[%s5214_s7 + $0x880] sm:$0xff] }
  0x5b   :  { %v2767_v36 = vpack.c.bf16 %v827_v34, %v819_v33 }
  0x5d   :  { %2748 = vmatpush1.bf16.msra.mxu1 %v2747_v38  ;;  %2658 = vmatpush1.bf16.msra.mxu0 %v2657_v61  ;;  %v842_v38 = vld [vmem:[%s5214_s7 + $0x6c8] sm:$0xff]  ;;  %v2775_v61 = vpack.c.bf16 %v859_v60, %v851_v59 }
  0x5e   :  { %2750 = vmatprep.subr.bf16.mxu1 %v2749_v43  ;;  %2660 = vmatprep.subr.bf16.mxu0 %v2659_v3  ;;  %v2671_v40 = vpack.c.bf16 %v842_v38, %v834_v37  ;;  %v841_v43 = vld [vmem:[%s5214_s7 + $0x6c0] sm:$0xff]  ;;  %v876_v3 = vld [vmem:[%s5214_s7 + $0x7d8] sm:$0xff]  ;;  %v914_v59 = vld [vmem:[%s5214_s7 + $0x908] sm:$0xff] }
  0x5f   :  { %v2673_v45 = vpack.c.bf16 %v841_v43, %v833_v42  ;;  %v2777_v6 = vpack.c.bf16 %v876_v3, %v868_v1  ;;  %v889_v37 = vld [vmem:[%s5214_s7 + $0x840] sm:$0xff]  ;;  %v906_v43 = vld [vmem:[%s5214_s7 + $0x8c8] sm:$0xff] }
  0x60   :  { %v2687_v55 = vpack.c.bf16 %v906_v43, %v898_v41  ;;  %v913_v3 = vld [vmem:[%s5214_s7 + $0x900] sm:$0xff]  ;;  %v972_v41 = vld [vmem:[%s5214_s7 + $0xad8] sm:$0xff] }
  0x61   :  { %2752 = vmatpush1.bf16.msra.mxu1 %v2751_v51  ;;  %2662 = vmatpush1.bf16.msra.mxu0 %v2661_v15  ;;  %v852_v51 = vld [vmem:[%s5214_s7 + $0x718] sm:$0xff]  ;;  %v2683_v15 = vpack.c.bf16 %v890_v13, %v882_v12 }
  0x62   :  { %2754 = vmatprep.subr.bf16.mxu1 %v2753_v57  ;;  %2664 = vmatprep.subr.bf16.mxu0 %v2663_v17  ;;  %v2773_v57 = vpack.c.bf16 %v860_v53, %v852_v51  ;;  %v905_v51 = vld [vmem:[%s5214_s7 + $0x8c0] sm:$0xff]  ;;  %v932_v12 = vld [vmem:[%s5214_s7 + $0x998] sm:$0xff] }
  0x63   :  { %v2689_v1 = vpack.c.bf16 %v905_v51, %v897_v50  ;;  %v940_v13 = vld [vmem:[%s5214_s7 + $0x9d8] sm:$0xff]  ;;  %v971_v50 = vld [vmem:[%s5214_s7 + $0xad0] sm:$0xff]  ;;  %v978_v51 = vld [vmem:[%s5214_s7 + $0xb08] sm:$0xff] }
  0x65   :  { %2756 = vmatpush1.bf16.msra.mxu1 %v2755_v2  ;;  %2666 = vmatpush1.bf16.msra.mxu0 %v2665_v27  ;;  %v2679_v2 = vpack.c.bf16 %v874_v63, %v866_v62  ;;  %v916_v62 = vld [vmem:[%s5214_s7 + $0x918] sm:$0xff] }
  0x66   :  { %2758 = vmatprep.subr.bf16.mxu1 %v2757_v7  ;;  %2668 = vmatprep.subr.bf16.mxu0 %v2667_v29  ;;  %v2681_v7 = vpack.c.bf16 %v873_v5, %v865_v4  ;;  %v924_v63 = vld [vmem:[%s5214_s7 + $0x958] sm:$0xff]  ;;  %v921_v4 = vld [vmem:[%s5214_s7 + $0x940] sm:$0xff] }
  0x69   :  { %2760 = vmatpush1.bf16.msra.mxu1 %v2759_v16  ;;  %2670 = vmatpush1.bf16.msra.mxu0 %v2669_v35  ;;  %v892_v16 = vld [vmem:[%s5214_s7 + $0x858] sm:$0xff] }
  0x6a   :  { %2762 = vmatprep.subr.bf16.mxu1 %v2761_v21  ;;  %2672 = vmatprep.subr.bf16.mxu0 %v2671_v40  ;;  %v2781_v17 = vpack.c.bf16 %v892_v16, %v884_v14  ;;  %v3959_v21 = vshrl.u32 %v604_v20, 7  ;;  %v891_v40 = vld [vmem:[%s5214_s7 + $0x850] sm:$0xff]  ;;  %v2693_v14 = vpack.c.bf16 %v921_v4, %v913_v3  ;;  %v929_v16 = vld [vmem:[%s5214_s7 + $0x980] sm:$0xff]  ;;  %v994_v4 = vld [vmem:[%s5214_s7 + $0xb88] sm:$0xff] }
  0x6b   :  { %v2783_v49 = vpack.c.bf16 %v891_v40, %v883_v39  ;;  %v931_v20 = vld [vmem:[%s5214_s7 + $0x990] sm:$0xff]  ;;  %v970_v39 = vld [vmem:[%s5214_s7 + $0xac8] sm:$0xff]  ;;  %v964_v40 = vld [vmem:[%s5214_s7 + $0xa98] sm:$0xff] }
  0x6c   :  { %v3962_v27 = vsub.s32 0, %v3959_v21  ;;  %v610_v29 = vsub.s32 1, %v3959_v21  ;;  %v987_v3 = vld [vmem:[%s5214_s7 + $0xb50] sm:$0xff] }
  0x6d   :  { %2764 = vmatpush1.bf16.msra.mxu1 %v2763_v28  ;;  %2674 = vmatpush1.bf16.msra.mxu0 %v2673_v45  ;;  %v3967_v28 = vld [vmem:[%s5217_s6] sm:$0x7]  ;;  %v908_v45 = vld [vmem:[%s5214_s7 + $0x8d8] sm:$0xff] }
  0x6e   :  { %2766 = vmatprep.subr.bf16.mxu1 %v2765_v32  ;;  %2676 = vmatprep.subr.bf16.mxu0 %v2675_v52  ;;  %v607_v30 = vrot.slane %v3967_v28, %v3962_v27  ;;  %v611_v32 = vrot.slane %v3967_v28, %v610_v29 }
  0x71   :  { %2768 = vmatpush1.bf16.msra.mxu1 %v2767_v36  ;;  %2678 = vmatpush1.bf16.msra.mxu0 %v2677_v58  ;;  %v881_v36 = vld [vmem:[%s5214_s7 + $0x800] sm:$0xff]  ;;  %v907_v58 = vld [vmem:[%s5214_s7 + $0x8d0] sm:$0xff] }
  0x72   :  { %2770 = vmatprep.subr.bf16.mxu1 %v2769_v44  ;;  %2680 = vmatprep.subr.bf16.mxu0 %v2679_v2  ;;  %v900_v44 = vld [vmem:[%s5214_s7 + $0x898] sm:$0xff] }
  0x73   :  { %v2785_v56 = vpack.c.bf16 %v908_v45, %v900_v44  ;;  %v961_v44 = vld [vmem:[%s5214_s7 + $0xa80] sm:$0xff] }
  0x74   :  { %v969_v45 = vld [vmem:[%s5214_s7 + $0xac0] sm:$0xff] }
  0x75   :  { %2772 = vmatpush1.bf16.msra.mxu1 %v2771_v48  ;;  %2682 = vmatpush1.bf16.msra.mxu0 %v2681_v7  ;;  %v2685_v48 = vpack.c.bf16 %v889_v37, %v881_v36  ;;  %v915_v7 = vld [vmem:[%s5214_s7 + $0x910] sm:$0xff] }
  0x76   :  { %2774 = vmatprep.subr.bf16.mxu1 %v2773_v57  ;;  %2684 = vmatprep.subr.bf16.mxu0 %v2683_v15  ;;  %v899_v57 = vld [vmem:[%s5214_s7 + $0x890] sm:$0xff]  ;;  %v2791_v15 = vpack.c.bf16 %v923_v9, %v915_v7  ;;  %v1004_v7 = vld [vmem:[%s5214_s7 + $0xbd8] sm:$0x3] }
  0x77   :  { %v2787_v2 = vpack.c.bf16 %v907_v58, %v899_v57  ;;  %v947_v36 = vld [vmem:[%s5214_s7 + $0xa10] sm:$0xff]  ;;  %v988_v57 = vld [vmem:[%s5214_s7 + $0xb58] sm:$0xff]  ;;  %v2705_v58 = vpack.c.bf16 %v969_v45, %v961_v44 }
  0x78   :  { %v955_v37 = vld [vmem:[%s5214_s7 + $0xa50] sm:$0xff]  ;;  %v1691_v9 = vld [vmem:[%s5218_s9 + $0x118] sm:$0xff] }
  0x79   :  { %2776 = vmatpush1.bf16.msra.mxu1 %v2775_v61  ;;  %v922_v61 = vld [vmem:[%s5214_s7 + $0x948] sm:$0xff]  ;;  %v2799_v43 = vpack.c.bf16 %v955_v37, %v947_v36  ;;  %v648_v36 = vld [vmem:[%s5214_s7 + $0xb8] sm:$0xff] }
  0x7a   :  { %2778 = vmatprep.subr.bf16.mxu1 %v2777_v6  ;;  %v2691_v5 = vpack.c.bf16 %v922_v61, %v914_v59  ;;  %v2789_v6 = vpack.c.bf16 %v924_v63, %v916_v62  ;;  %v985_v61 = vld [vmem:[%s5214_s7 + $0xb40] sm:$0xff]  ;;  %v614_v62 = vsub.s32 2, %v3959_v21  ;;  %v656_v37 = vld [vmem:[%s5214_s7 + $0xf8] sm:$0xff] }
  0x7b   :  { %v2917_v45 = vpack.c.bf16 %v656_v37, %v648_v36  ;;  %v717_v36 = vld [vmem:[%s5214_s7 + $0x2e0] sm:$0xff]  ;;  %v711_v37 = vld [vmem:[%s5214_s7 + $0x2b0] sm:$0xff] }
  0x7d   :  { %2780 = vmatpush1.bf16.msra.mxu1 %v2779_v11  ;;  %v938_v11 = vld [vmem:[%s5214_s7 + $0x9c8] sm:$0xff] }
  0x7e   :  { %2782 = vmatprep.subr.bf16.mxu1 %v2781_v17  ;;  %v937_v17 = vld [vmem:[%s5214_s7 + $0x9c0] sm:$0xff] }
  0xef   :  { %v277_v18 = vpop.f32.mrb[0].mxu1 }
  0xf0   :  { %v2461_v19 = vpop.f32.mrb[1].mxu1 }
  0xf1   :  { %v2793_v19 = vpack.c.bf16 %v940_v13, %v932_v12  ;;  %v993_v12 = vld [vmem:[%s5214_s7 + $0xb80] sm:$0xff] }
  0xf2   :  { %v1001_v13 = vld [vmem:[%s5214_s7 + $0xbc0] sm:$0x3] }
 0x107   :  { %v430_v22 = vpop.f32.mrb[2].mxu1  ;;  %v359_v23 = vpop.f32.mrb[0].mxu0 }
 0x108   :  { %v431_v24 = vadd.f32 %v430_v22, %v277_v18  ;;  %v2488_v25 = vpop.f32.mrb[3].mxu1  ;;  %v361_v26 = vpop.f32.mrb[1].mxu0  ;;  %v2695_v18 = vpack.c.bf16 %v938_v11, %v930_v10  ;;  %v939_v22 = vld [vmem:[%s5214_s7 + $0x9d0] sm:$0xff] }
 0x109   :  { %v948_v25 = vld [vmem:[%s5214_s7 + $0xa18] sm:$0xff] }
 0x10d   :  { %v524_v31 = vpop.f32.mrb[4].mxu1 }
 0x10e   :  { %v3147_v33 = vadd.f32 %v524_v31, %v359_v23  ;;  %v526_v34 = vpop.f32.mrb[5].mxu1  ;;  %v946_v23 = vld [vmem:[%s5214_s7 + $0xa08] sm:$0xff]  ;;  %v2795_v31 = vpack.c.bf16 %v939_v22, %v931_v20  ;;  %v632_v20 = vld [vmem:[%s5214_s7 + $0x38] sm:$0xff] }
 0x10f   :  { %v3148_v35 = vadd.f32 %v526_v34, %v361_v26  ;;  %v956_v26 = vld [vmem:[%s5214_s7 + $0xa58] sm:$0xff] }
 0x110   :  { %v619_v38 = vadd.f32 %v3147_v33, %v607_v30  ;;  %v2697_v30 = vpack.c.bf16 %v937_v17, %v929_v16  ;;  %v953_v33 = vld [vmem:[%s5214_s7 + $0xa40] sm:$0xff]  ;;  %v995_v17 = vld [vmem:[%s5214_s7 + $0xb90] sm:$0xff]  ;;  %v640_v22 = vld [vmem:[%s5214_s7 + $0x78] sm:$0xff] }
 0x111   :  { %v620_v42 = vadd.f32 %v3148_v35, %v611_v32  ;;  %v945_v32 = vld [vmem:[%s5214_s7 + $0xa00] sm:$0xff]  ;;  %v2797_v35 = vpack.c.bf16 %v956_v26, %v948_v25 }
 0x112   :  { %v4007_v52 = vmax.f32 %v619_v38, 0.0  ;;  %v962_v38 = vld [vmem:[%s5214_s7 + $0xa88] sm:$0xff] }
 0x113   :  { %v3999_v46 = vmax.f32 %v620_v42, 0.0  ;;  %v595_v47 = vpop.f32.mrb[6].mxu1  ;;  %v2701_v42 = vpack.c.bf16 %v953_v33, %v945_v32  ;;  %v637_v32 = vld [vmem:[%s5214_s7 + $0x60] sm:$0xff]  ;;  %v639_v33 = vld [vmem:[%s5214_s7 + $0x70] sm:$0xff] }
 0x114   :  { %v4009_v53 = vadd.f32 %v595_v47, %v431_v24  ;;  %v2497_v60 = vpop.f32.mrb[7].mxu1  ;;  %v954_v24 = vld [vmem:[%s5214_s7 + $0xa48] sm:$0xff]  ;;  %v2703_v47 = vpack.c.bf16 %v970_v39, %v962_v38 }
 0x115   :  { %1144 = vmatprep.mubr.f32.mxu0 %v3999_v46  ;;  %1286 = vmatprep.mubr.f32.mxu1 %v3999_v46  ;;  %v2699_v34 = vpack.c.bf16 %v954_v24, %v946_v23  ;;  %v977_v60 = vld [vmem:[%s5214_s7 + $0xb00] sm:$0xff]  ;;  %v2714_v23 = vpack.c.bf16 %v1001_v13, %v993_v12  ;;  %v687_v13 = vld [vmem:[%s5214_s7 + $0x1f0] sm:$0xff] }
 0x116   :  { %1145 = vmatmul.mubr.f32.vlgmr.msra.gmra.mrb[2].mxu0 %v4007_v52  ;;  %1287 = vmatmul.mubr.f32.vlgmr.msra.gmra.mrb[8].mxu1 %v4007_v52  ;;  %v2709_v10 = vpack.c.bf16 %v985_v61, %v977_v60  ;;  %v663_v60 = vld [vmem:[%s5214_s7 + $0x130] sm:$0xff] }
 0x117   :  { %2686 = vmatpush1.bf16.msra.mxu0 %v2685_v48  ;;  %2784 = vmatpush1.bf16.msra.mxu1 %v2783_v49  ;;  %v2801_v48 = vpack.c.bf16 %v972_v41, %v964_v40  ;;  %v963_v49 = vld [vmem:[%s5214_s7 + $0xa90] sm:$0xff]  ;;  %v645_v41 = vld [vmem:[%s5214_s7 + $0xa0] sm:$0xff] }
 0x118   :  { %2688 = vmatprep.subr.bf16.mxu0 %v2687_v55  ;;  %2786 = vmatprep.subr.bf16.mxu1 %v2785_v56  ;;  %v986_v55 = vld [vmem:[%s5214_s7 + $0xb48] sm:$0xff]  ;;  %v980_v56 = vld [vmem:[%s5214_s7 + $0xb18] sm:$0xff]  ;;  %v2803_v59 = vpack.c.bf16 %v971_v50, %v963_v49 }
 0x119   :  { %1215 = vmatprep.mubr.f32.mxu0 %v3179_v8  ;;  %1357 = vmatprep.mubr.f32.mxu1 %v3179_v8  ;;  %v2707_v63 = vpack.c.bf16 %v986_v55, %v978_v51  ;;  %v670_v49 = vld [vmem:[%s5214_s7 + $0x168] sm:$0xff]  ;;  %v664_v50 = vld [vmem:[%s5214_s7 + $0x138] sm:$0xff] }
 0x11a   :  { %v672_v51 = vld [vmem:[%s5214_s7 + $0x178] sm:$0xff] }
 0x11b   :  { %2690 = vmatpush1.bf16.msra.mxu0 %v2689_v1  ;;  %2788 = vmatpush1.bf16.msra.mxu1 %v2787_v2  ;;  %v2805_v1 = vpack.c.bf16 %v988_v57, %v980_v56  ;;  %v979_v2 = vld [vmem:[%s5214_s7 + $0xb10] sm:$0xff]  ;;  %v2921_v61 = vpack.c.bf16 %v672_v51, %v664_v50  ;;  %v733_v50 = vld [vmem:[%s5214_s7 + $0x360] sm:$0xff] }
 0x11c   :  { %2692 = vmatprep.subr.bf16.mxu0 %v2691_v5  ;;  %2790 = vmatprep.subr.bf16.mxu1 %v2789_v6  ;;  %v1002_v5 = vld [vmem:[%s5214_s7 + $0xbc8] sm:$0x3]  ;;  %v996_v6 = vld [vmem:[%s5214_s7 + $0xb98] sm:$0xff]  ;;  %v2807_v11 = vpack.c.bf16 %v987_v3, %v979_v2  ;;  %v727_v51 = vld [vmem:[%s5214_s7 + $0x330] sm:$0xff] }
 0x11d   :  { %v2809_v16 = vpack.c.bf16 %v1004_v7, %v996_v6  ;;  %v680_v2 = vld [vmem:[%s5214_s7 + $0x1b8] sm:$0xff]  ;;  %v677_v7 = vld [vmem:[%s5214_s7 + $0x1a0] sm:$0xff] }
 0x11e   :  { %v688_v3 = vld [vmem:[%s5214_s7 + $0x1f8] sm:$0xff] }
 0x11f   :  { %2694 = vmatpush1.bf16.msra.mxu0 %v2693_v14  ;;  %2792 = vmatpush1.bf16.msra.mxu1 %v2791_v15  ;;  %v615_v14 = vrot.slane %v3967_v28, %v614_v62  ;;  %v2711_v15 = vpack.c.bf16 %v1002_v5, %v994_v4  ;;  %v638_v28 = vld [vmem:[%s5214_s7 + $0x68] sm:$0xff]  ;;  %v2925_v12 = vpack.c.bf16 %v688_v3, %v680_v2  ;;  %v749_v2 = vld [vmem:[%s5214_s7 + $0x3e0] sm:$0xff]  ;;  %v743_v3 = vld [vmem:[%s5214_s7 + $0x3b0] sm:$0xff] }
 0x120   :  { %2696 = vmatprep.subr.bf16.mxu0 %v2695_v18  ;;  %2794 = vmatprep.subr.bf16.mxu1 %v2793_v19  ;;  %v1003_v18 = vld [vmem:[%s5214_s7 + $0xbd0] sm:$0x3]  ;;  %v630_v19 = vld [vmem:[%s5214_s7 + $0x28] sm:$0xff] }
 0x121   :  { %v2812_v24 = vpack.c.bf16 %v1003_v18, %v995_v17  ;;  %v621_v25 = vadd.f32 %v615_v14, %v4009_v53  ;;  %v2815_v26 = vpack.c.bf16 %v638_v28, %v630_v19  ;;  %v631_v53 = vld [vmem:[%s5214_s7 + $0x30] sm:$0xff]  ;;  %v694_v14 = vld [vmem:[%s5214_s7 + $0x228] sm:$0xff]  ;;  %v704_v17 = vld [vmem:[%s5214_s7 + $0x278] sm:$0xff] }
 0x122   :  { %v2915_v40 = vpack.c.bf16 %v639_v33, %v631_v53 }
 0x123   :  { %2698 = vmatpush1.bf16.msra.mxu0 %v2697_v30  ;;  %2796 = vmatpush1.bf16.msra.mxu1 %v2795_v31  ;;  %v2913_v30 = vpack.c.bf16 %v640_v22, %v632_v20  ;;  %v629_v31 = vld [vmem:[%s5214_s7 + $0x20] sm:$0xff]  ;;  %v4221_v39 = vmax.f32 %v621_v25, 0.0  ;;  %v703_v25 = vld [vmem:[%s5214_s7 + $0x270] sm:$0xff] }
 0x124   :  { %2700 = vmatprep.subr.bf16.mxu0 %v2699_v34  ;;  %2798 = vmatprep.subr.bf16.mxu1 %v2797_v35  ;;  %v646_v34 = vld [vmem:[%s5214_s7 + $0xa8] sm:$0xff]  ;;  %v2817_v38 = vpack.c.bf16 %v637_v32, %v629_v31  ;;  %v693_v20 = vld [vmem:[%s5214_s7 + $0x220] sm:$0xff]  ;;  %v712_v31 = vld [vmem:[%s5214_s7 + $0x2b8] sm:$0xff] }
 0x125   :  { %v654_v35 = vld [vmem:[%s5214_s7 + $0xe8] sm:$0xff]  ;;  %v701_v22 = vld [vmem:[%s5214_s7 + $0x260] sm:$0xff]  ;;  %v720_v32 = vld [vmem:[%s5214_s7 + $0x2f8] sm:$0xff] }
 0x126   :  { %v2819_v44 = vpack.c.bf16 %v654_v35, %v646_v34  ;;  %v2833_v53 = vpack.c.bf16 %v701_v22, %v693_v20  ;;  %v709_v35 = vld [vmem:[%s5214_s7 + $0x2a0] sm:$0xff]  ;;  %v782_v20 = vld [vmem:[%s5214_s7 + $0x4e8] sm:$0xff]  ;;  %v776_v22 = vld [vmem:[%s5214_s7 + $0x4b8] sm:$0xff] }
 0x127   :  { %2702 = vmatpush1.bf16.msra.mxu0 %v2701_v42  ;;  %2800 = vmatpush1.bf16.msra.mxu1 %v2799_v43  ;;  %v653_v42 = vld [vmem:[%s5214_s7 + $0xe0] sm:$0xff]  ;;  %v647_v43 = vld [vmem:[%s5214_s7 + $0xb0] sm:$0xff] }
 0x128   :  { %2704 = vmatprep.subr.bf16.mxu0 %v2703_v47  ;;  %2802 = vmatprep.subr.bf16.mxu1 %v2801_v48  ;;  %v655_v47 = vld [vmem:[%s5214_s7 + $0xf0] sm:$0xff]  ;;  %v662_v48 = vld [vmem:[%s5214_s7 + $0x128] sm:$0xff]  ;;  %v2821_v55 = vpack.c.bf16 %v653_v42, %v645_v41 }
 0x129   :  { %v2919_v56 = vpack.c.bf16 %v655_v47, %v647_v43  ;;  %v2823_v57 = vpack.c.bf16 %v670_v49, %v662_v48  ;;  %v726_v41 = vld [vmem:[%s5214_s7 + $0x328] sm:$0xff]  ;;  %v728_v43 = vld [vmem:[%s5214_s7 + $0x338] sm:$0xff]  ;;  %v725_v49 = vld [vmem:[%s5214_s7 + $0x320] sm:$0xff] }
 0x12a   :  { %v734_v42 = vld [vmem:[%s5214_s7 + $0x368] sm:$0xff] }
 0x12b   :  { %2706 = vmatpush1.bf16.msra.mxu0 %v2705_v58  ;;  %2804 = vmatpush1.bf16.msra.mxu1 %v2803_v59  ;;  %v661_v58 = vld [vmem:[%s5214_s7 + $0x120] sm:$0xff]  ;;  %v2839_v48 = vpack.c.bf16 %v734_v42, %v726_v41 }
 0x12c   :  { %2708 = vmatprep.subr.bf16.mxu0 %v2707_v63  ;;  %2806 = vmatprep.subr.bf16.mxu1 %v2805_v1  ;;  %v669_v59 = vld [vmem:[%s5214_s7 + $0x160] sm:$0xff]  ;;  %v678_v63 = vld [vmem:[%s5214_s7 + $0x1a8] sm:$0xff] }
 0x12d   :  { %v686_v1 = vld [vmem:[%s5214_s7 + $0x1e8] sm:$0xff]  ;;  %v2825_v4 = vpack.c.bf16 %v669_v59, %v661_v58  ;;  %v744_v59 = vld [vmem:[%s5214_s7 + $0x3b8] sm:$0xff]  ;;  %v789_v42 = vld [vmem:[%s5214_s7 + $0x520] sm:$0xff] }
 0x12e   :  { %v2827_v6 = vpack.c.bf16 %v686_v1, %v678_v63  ;;  %v750_v58 = vld [vmem:[%s5214_s7 + $0x3e8] sm:$0xff]  ;;  %v741_v1 = vld [vmem:[%s5214_s7 + $0x3a0] sm:$0xff] }
 0x12f   :  { %2710 = vmatpush1.bf16.msra.mxu0 %v2709_v10  ;;  %2808 = vmatpush1.bf16.msra.mxu1 %v2807_v11  ;;  %v685_v10 = vld [vmem:[%s5214_s7 + $0x1e0] sm:$0xff]  ;;  %v679_v11 = vld [vmem:[%s5214_s7 + $0x1b0] sm:$0xff] }
 0x130   :  { %2713 = vmatprep.subr.msk.bf16.mxu0 %vm4157_vm8, %v2711_v15  ;;  %2811 = vmatprep.subr.msk.bf16.mxu1 %vm4157_vm8, %v2809_v16  ;;  %v702_v15 = vld [vmem:[%s5214_s7 + $0x268] sm:$0xff]  ;;  %v696_v16 = vld [vmem:[%s5214_s7 + $0x238] sm:$0xff]  ;;  %v2829_v18 = vpack.c.bf16 %v685_v10, %v677_v7  ;;  %v2927_v19 = vpack.c.bf16 %v687_v13, %v679_v11 }
 0x131   :  { %v2831_v28 = vpack.c.bf16 %v702_v15, %v694_v14  ;;  %v766_v7 = vld [vmem:[%s5214_s7 + $0x468] sm:$0xff]  ;;  %v760_v10 = vld [vmem:[%s5214_s7 + $0x438] sm:$0xff]  ;;  %v757_v15 = vld [vmem:[%s5214_s7 + $0x420] sm:$0xff] }
 0x132   :  { %v768_v11 = vld [vmem:[%s5214_s7 + $0x478] sm:$0xff] }
 0x133   :  { %2716 = vmatpush1.bf16.msk.msra.mxu0 %vm4157_vm8, %v2714_v23  ;;  %2814 = vmatpush1.bf16.msk.msra.mxu1 %vm4157_vm8, %v2812_v24  ;;  %v695_v23 = vld [vmem:[%s5214_s7 + $0x230] sm:$0xff]  ;;  %v2929_v24 = vpack.c.bf16 %v704_v17, %v696_v16  ;;  %v765_v16 = vld [vmem:[%s5214_s7 + $0x460] sm:$0xff] }
 0x134   :  { %2816 = vmatprep.subr.bf16.mxu0 %v2815_v26  ;;  %2914 = vmatprep.subr.bf16.mxu1 %v2913_v30  ;;  %v710_v26 = vld [vmem:[%s5214_s7 + $0x2a8] sm:$0xff]  ;;  %v2931_v33 = vpack.c.bf16 %v703_v25, %v695_v23  ;;  %v759_v17 = vld [vmem:[%s5214_s7 + $0x430] sm:$0xff]  ;;  %v784_v23 = vld [vmem:[%s5214_s7 + $0x4f8] sm:$0xff] }
 0x135   :  { %v718_v30 = vld [vmem:[%s5214_s7 + $0x2e8] sm:$0xff] }
 0x136   :  { %2272 = vmatmul.mubr.msk.f32.vlgmr.msra.gmra.mrb[2].mxu0 %vm1051_vm9, %v4221_v39  ;;  %2275 = vmatmul.mubr.msk.f32.vlgmr.msra.gmra.mrb[8].mxu1 %vm1051_vm9, %v4221_v39  ;;  %v2835_v34 = vpack.c.bf16 %v718_v30, %v710_v26  ;;  %v773_v30 = vld [vmem:[%s5214_s7 + $0x4a0] sm:$0xff] }
 0x137   :  { %2818 = vmatpush1.bf16.msra.mxu0 %v2817_v38  ;;  %1428 = vmatprep.mubr.f32.mxu0 %v3999_v46  ;;  %v2933_v38 = vpack.c.bf16 %v720_v32, %v712_v31  ;;  %v781_v31 = vld [vmem:[%s5214_s7 + $0x4e0] sm:$0xff]  ;;  %v775_v32 = vld [vmem:[%s5214_s7 + $0x4b0] sm:$0xff] }
 0x138   :  { %2916 = vmatpush1.bf16.msra.mxu1 %v2915_v40  ;;  %1570 = vmatprep.mubr.f32.mxu1 %v3999_v46  ;;  %v671_v46 = vld [vmem:[%s5214_s7 + $0x170] sm:$0xff] }
 0x139   :  { %2820 = vmatprep.subr.bf16.mxu0 %v2819_v44  ;;  %2918 = vmatprep.subr.bf16.mxu1 %v2917_v45  ;;  %v2923_v5 = vpack.c.bf16 %v671_v46, %v663_v60  ;;  %v719_v40 = vld [vmem:[%s5214_s7 + $0x2f0] sm:$0xff]  ;;  %v736_v44 = vld [vmem:[%s5214_s7 + $0x378] sm:$0xff]  ;;  %v2837_v45 = vpack.c.bf16 %v717_v36, %v709_v35  ;;  %v798_v35 = vld [vmem:[%s5214_s7 + $0x568] sm:$0xff] }
 0x13a   :  { %v2935_v47 = vpack.c.bf16 %v719_v40, %v711_v37  ;;  %v752_v60 = vld [vmem:[%s5214_s7 + $0x3f8] sm:$0xff] }
 0x13b   :  { %2822 = vmatpush1.bf16.msra.mxu0 %v2821_v55  ;;  %v2937_v55 = vpack.c.bf16 %v736_v44, %v728_v43  ;;  %v792_v36 = vld [vmem:[%s5214_s7 + $0x538] sm:$0xff]  ;;  %v797_v43 = vld [vmem:[%s5214_s7 + $0x560] sm:$0xff]  ;;  %v791_v44 = vld [vmem:[%s5214_s7 + $0x530] sm:$0xff] }
 0x13c   :  { %2920 = vmatpush1.bf16.msra.mxu1 %v2919_v56  ;;  %2824 = vmatprep.subr.bf16.mxu0 %v2823_v57  ;;  %v735_v56 = vld [vmem:[%s5214_s7 + $0x370] sm:$0xff]  ;;  %v742_v57 = vld [vmem:[%s5214_s7 + $0x3a8] sm:$0xff]  ;;  %v800_v37 = vld [vmem:[%s5214_s7 + $0x578] sm:$0xff] }
 0x13d   :  { %2922 = vmatprep.subr.bf16.mxu1 %v2921_v61  ;;  %v2841_v61 = vpack.c.bf16 %v733_v50, %v725_v49  ;;  %v2939_v46 = vpack.c.bf16 %v735_v56, %v727_v51  ;;  %v2843_v63 = vpack.c.bf16 %v750_v58, %v742_v57  ;;  %v814_v49 = vld [vmem:[%s5214_s7 + $0x5e8] sm:$0xff]  ;;  %v808_v50 = vld [vmem:[%s5214_s7 + $0x5b8] sm:$0xff]  ;;  %v805_v58 = vld [vmem:[%s5214_s7 + $0x5a0] sm:$0xff] }
 0x13e   :  { %v816_v51 = vld [vmem:[%s5214_s7 + $0x5f8] sm:$0xff] }
 0x13f   :  { %2826 = vmatpush1.bf16.msra.mxu0 %v2825_v4  ;;  %v2941_v4 = vpack.c.bf16 %v752_v60, %v744_v59  ;;  %v813_v59 = vld [vmem:[%s5214_s7 + $0x5e0] sm:$0xff]  ;;  %v807_v60 = vld [vmem:[%s5214_s7 + $0x5b0] sm:$0xff] }
 0x140   :  { %2924 = vmatpush1.bf16.msra.mxu1 %v2923_v5  ;;  %2828 = vmatprep.subr.bf16.mxu0 %v2827_v6  ;;  %v751_v5 = vld [vmem:[%s5214_s7 + $0x3f0] sm:$0xff]  ;;  %v758_v6 = vld [vmem:[%s5214_s7 + $0x428] sm:$0xff] }
 0x141   :  { %2926 = vmatprep.subr.bf16.mxu1 %v2925_v12  ;;  %v2845_v12 = vpack.c.bf16 %v749_v2, %v741_v1  ;;  %v2943_v13 = vpack.c.bf16 %v751_v5, %v743_v3  ;;  %v2847_v14 = vpack.c.bf16 %v766_v7, %v758_v6  ;;  %v830_v1 = vld [vmem:[%s5214_s7 + $0x668] sm:$0xff]  ;;  %v824_v2 = vld [vmem:[%s5214_s7 + $0x638] sm:$0xff]  ;;  %v821_v7 = vld [vmem:[%s5214_s7 + $0x620] sm:$0xff] }
 0x142   :  { %v832_v3 = vld [vmem:[%s5214_s7 + $0x678] sm:$0xff] }
 0x143   :  { %2830 = vmatpush1.bf16.msra.mxu0 %v2829_v18  ;;  %v2945_v18 = vpack.c.bf16 %v768_v11, %v760_v10  ;;  %v829_v10 = vld [vmem:[%s5214_s7 + $0x660] sm:$0xff]  ;;  %v823_v11 = vld [vmem:[%s5214_s7 + $0x630] sm:$0xff] }
 0x144   :  { %2928 = vmatpush1.bf16.msra.mxu1 %v2927_v19  ;;  %2832 = vmatprep.subr.bf16.mxu0 %v2831_v28  ;;  %v767_v19 = vld [vmem:[%s5214_s7 + $0x470] sm:$0xff]  ;;  %v774_v28 = vld [vmem:[%s5214_s7 + $0x4a8] sm:$0xff] }
 0x145   :  { %2930 = vmatprep.subr.bf16.mxu1 %v2929_v24  ;;  %v2849_v24 = vpack.c.bf16 %v765_v16, %v757_v15  ;;  %v2947_v25 = vpack.c.bf16 %v767_v19, %v759_v17  ;;  %v2851_v26 = vpack.c.bf16 %v782_v20, %v774_v28  ;;  %v846_v15 = vld [vmem:[%s5214_s7 + $0x6e8] sm:$0xff]  ;;  %v840_v16 = vld [vmem:[%s5214_s7 + $0x6b8] sm:$0xff]  ;;  %v837_v20 = vld [vmem:[%s5214_s7 + $0x6a0] sm:$0xff] }
 0x146   :  { %v848_v17 = vld [vmem:[%s5214_s7 + $0x6f8] sm:$0xff] }
 0x147   :  { %2834 = vmatpush1.bf16.msra.mxu0 %v2833_v53  ;;  %v2949_v53 = vpack.c.bf16 %v784_v23, %v776_v22  ;;  %v845_v22 = vld [vmem:[%s5214_s7 + $0x6e0] sm:$0xff]  ;;  %v839_v23 = vld [vmem:[%s5214_s7 + $0x6b0] sm:$0xff] }
 0x148   :  { %2932 = vmatpush1.bf16.msra.mxu1 %v2931_v33  ;;  %2836 = vmatprep.subr.bf16.mxu0 %v2835_v34  ;;  %v783_v33 = vld [vmem:[%s5214_s7 + $0x4f0] sm:$0xff]  ;;  %v790_v34 = vld [vmem:[%s5214_s7 + $0x528] sm:$0xff] }
 0x149   :  { %2934 = vmatprep.subr.bf16.mxu1 %v2933_v38  ;;  %v2853_v38 = vpack.c.bf16 %v781_v31, %v773_v30  ;;  %v2951_v40 = vpack.c.bf16 %v783_v33, %v775_v32  ;;  %v2855_v41 = vpack.c.bf16 %v798_v35, %v790_v34  ;;  %v862_v30 = vld [vmem:[%s5214_s7 + $0x768] sm:$0xff]  ;;  %v856_v31 = vld [vmem:[%s5214_s7 + $0x738] sm:$0xff]  ;;  %v853_v35 = vld [vmem:[%s5214_s7 + $0x720] sm:$0xff] }
 0x14a   :  { %v864_v32 = vld [vmem:[%s5214_s7 + $0x778] sm:$0xff] }
 0x14b   :  { %2838 = vmatpush1.bf16.msra.mxu0 %v2837_v45  ;;  %v2953_v45 = vpack.c.bf16 %v800_v37, %v792_v36  ;;  %v861_v36 = vld [vmem:[%s5214_s7 + $0x760] sm:$0xff]  ;;  %v855_v37 = vld [vmem:[%s5214_s7 + $0x730] sm:$0xff] }
 0x14c   :  { %2936 = vmatpush1.bf16.msra.mxu1 %v2935_v47  ;;  %2840 = vmatprep.subr.bf16.mxu0 %v2839_v48  ;;  %v799_v47 = vld [vmem:[%s5214_s7 + $0x570] sm:$0xff]  ;;  %v806_v48 = vld [vmem:[%s5214_s7 + $0x5a8] sm:$0xff] }
 0x14d   :  { %2938 = vmatprep.subr.bf16.mxu1 %v2937_v55  ;;  %v2857_v55 = vpack.c.bf16 %v797_v43, %v789_v42  ;;  %v2955_v56 = vpack.c.bf16 %v799_v47, %v791_v44  ;;  %v2859_v57 = vpack.c.bf16 %v814_v49, %v806_v48  ;;  %v878_v42 = vld [vmem:[%s5214_s7 + $0x7e8] sm:$0xff]  ;;  %v872_v43 = vld [vmem:[%s5214_s7 + $0x7b8] sm:$0xff]  ;;  %v869_v49 = vld [vmem:[%s5214_s7 + $0x7a0] sm:$0xff] }
 0x14e   :  { %v880_v44 = vld [vmem:[%s5214_s7 + $0x7f8] sm:$0xff] }
 0x14f   :  { %2842 = vmatpush1.bf16.msra.mxu0 %v2841_v61  ;;  %v2957_v61 = vpack.c.bf16 %v816_v51, %v808_v50  ;;  %v877_v50 = vld [vmem:[%s5214_s7 + $0x7e0] sm:$0xff]  ;;  %v871_v51 = vld [vmem:[%s5214_s7 + $0x7b0] sm:$0xff] }
 0x150   :  { %2940 = vmatpush1.bf16.msra.mxu1 %v2939_v46  ;;  %2844 = vmatprep.subr.bf16.mxu0 %v2843_v63  ;;  %v815_v46 = vld [vmem:[%s5214_s7 + $0x5f0] sm:$0xff]  ;;  %v822_v63 = vld [vmem:[%s5214_s7 + $0x628] sm:$0xff] }
 0x151   :  { %2942 = vmatprep.subr.bf16.mxu1 %v2941_v4  ;;  %v2861_v4 = vpack.c.bf16 %v813_v59, %v805_v58  ;;  %v2959_v5 = vpack.c.bf16 %v815_v46, %v807_v60  ;;  %v2863_v6 = vpack.c.bf16 %v830_v1, %v822_v63  ;;  %v894_v58 = vld [vmem:[%s5214_s7 + $0x868] sm:$0xff]  ;;  %v888_v59 = vld [vmem:[%s5214_s7 + $0x838] sm:$0xff]  ;;  %v885_v1 = vld [vmem:[%s5214_s7 + $0x820] sm:$0xff] }
 0x152   :  { %v896_v60 = vld [vmem:[%s5214_s7 + $0x878] sm:$0xff] }
 0x153   :  { %2846 = vmatpush1.bf16.msra.mxu0 %v2845_v12  ;;  %v2961_v12 = vpack.c.bf16 %v832_v3, %v824_v2  ;;  %v893_v2 = vld [vmem:[%s5214_s7 + $0x860] sm:$0xff]  ;;  %v887_v3 = vld [vmem:[%s5214_s7 + $0x830] sm:$0xff] }
 0x154   :  { %2944 = vmatpush1.bf16.msra.mxu1 %v2943_v13  ;;  %2848 = vmatprep.subr.bf16.mxu0 %v2847_v14  ;;  %v831_v13 = vld [vmem:[%s5214_s7 + $0x670] sm:$0xff]  ;;  %v838_v14 = vld [vmem:[%s5214_s7 + $0x6a8] sm:$0xff] }
 0x155   :  { %2946 = vmatprep.subr.bf16.mxu1 %v2945_v18  ;;  %v2865_v18 = vpack.c.bf16 %v829_v10, %v821_v7  ;;  %v2963_v19 = vpack.c.bf16 %v831_v13, %v823_v11  ;;  %v2867_v28 = vpack.c.bf16 %v846_v15, %v838_v14  ;;  %v910_v7 = vld [vmem:[%s5214_s7 + $0x8e8] sm:$0xff]  ;;  %v904_v10 = vld [vmem:[%s5214_s7 + $0x8b8] sm:$0xff]  ;;  %v901_v15 = vld [vmem:[%s5214_s7 + $0x8a0] sm:$0xff] }
 0x156   :  { %v912_v11 = vld [vmem:[%s5214_s7 + $0x8f8] sm:$0xff] }
 0x157   :  { %2850 = vmatpush1.bf16.msra.mxu0 %v2849_v24  ;;  %v2965_v24 = vpack.c.bf16 %v848_v17, %v840_v16  ;;  %v909_v16 = vld [vmem:[%s5214_s7 + $0x8e0] sm:$0xff]  ;;  %v903_v17 = vld [vmem:[%s5214_s7 + $0x8b0] sm:$0xff] }
 0x158   :  { %2948 = vmatpush1.bf16.msra.mxu1 %v2947_v25  ;;  %2852 = vmatprep.subr.bf16.mxu0 %v2851_v26  ;;  %v847_v25 = vld [vmem:[%s5214_s7 + $0x6f0] sm:$0xff]  ;;  %v854_v26 = vld [vmem:[%s5214_s7 + $0x728] sm:$0xff] }
 0x159   :  { %2950 = vmatprep.subr.bf16.mxu1 %v2949_v53  ;;  %v2869_v53 = vpack.c.bf16 %v845_v22, %v837_v20  ;;  %v2967_v33 = vpack.c.bf16 %v847_v25, %v839_v23  ;;  %v2871_v34 = vpack.c.bf16 %v862_v30, %v854_v26  ;;  %v926_v20 = vld [vmem:[%s5214_s7 + $0x968] sm:$0xff]  ;;  %v920_v22 = vld [vmem:[%s5214_s7 + $0x938] sm:$0xff]  ;;  %v917_v30 = vld [vmem:[%s5214_s7 + $0x920] sm:$0xff] }
 0x15a   :  { %v928_v23 = vld [vmem:[%s5214_s7 + $0x978] sm:$0xff] }
 0x15b   :  { %2854 = vmatpush1.bf16.msra.mxu0 %v2853_v38  ;;  %v2969_v38 = vpack.c.bf16 %v864_v32, %v856_v31  ;;  %v925_v31 = vld [vmem:[%s5214_s7 + $0x960] sm:$0xff]  ;;  %v919_v32 = vld [vmem:[%s5214_s7 + $0x930] sm:$0xff] }
 0x15c   :  { %2952 = vmatpush1.bf16.msra.mxu1 %v2951_v40  ;;  %2856 = vmatprep.subr.bf16.mxu0 %v2855_v41  ;;  %v863_v40 = vld [vmem:[%s5214_s7 + $0x770] sm:$0xff]  ;;  %v870_v41 = vld [vmem:[%s5214_s7 + $0x7a8] sm:$0xff] }
 0x15d   :  { %2954 = vmatprep.subr.bf16.mxu1 %v2953_v45  ;;  %v2873_v45 = vpack.c.bf16 %v861_v36, %v853_v35  ;;  %v2971_v47 = vpack.c.bf16 %v863_v40, %v855_v37  ;;  %v2875_v48 = vpack.c.bf16 %v878_v42, %v870_v41  ;;  %v936_v35 = vld [vmem:[%s5214_s7 + $0x9b8] sm:$0xff]  ;;  %v2889_v37 = vpack.c.bf16 %v925_v31, %v917_v30  ;;  %v933_v41 = vld [vmem:[%s5214_s7 + $0x9a0] sm:$0xff] }
 0x15e   :  { %v944_v36 = vld [vmem:[%s5214_s7 + $0x9f8] sm:$0xff]  ;;  %v941_v42 = vld [vmem:[%s5214_s7 + $0x9e0] sm:$0xff] }
 0x15f   :  { %2858 = vmatpush1.bf16.msra.mxu0 %v2857_v55  ;;  %v2973_v55 = vpack.c.bf16 %v880_v44, %v872_v43  ;;  %v935_v43 = vld [vmem:[%s5214_s7 + $0x9b0] sm:$0xff]  ;;  %v2989_v44 = vpack.c.bf16 %v944_v36, %v936_v35  ;;  %v1000_v30 = vld [vmem:[%s5214_s7 + $0xbb8] sm:$0xff] }
 0x160   :  { %2956 = vmatpush1.bf16.msra.mxu1 %v2955_v56  ;;  %2860 = vmatprep.subr.bf16.mxu0 %v2859_v57  ;;  %v879_v56 = vld [vmem:[%s5214_s7 + $0x7f0] sm:$0xff]  ;;  %v886_v57 = vld [vmem:[%s5214_s7 + $0x828] sm:$0xff]  ;;  %v1008_v31 = vld [vmem:[%s5214_s7 + $0xbf8] sm:$0x3] }
 0x161   :  { %2958 = vmatprep.subr.bf16.mxu1 %v2957_v61  ;;  %v2877_v61 = vpack.c.bf16 %v877_v50, %v869_v49  ;;  %v2975_v46 = vpack.c.bf16 %v879_v56, %v871_v51  ;;  %v2879_v63 = vpack.c.bf16 %v894_v58, %v886_v57  ;;  %v952_v49 = vld [vmem:[%s5214_s7 + $0xa38] sm:$0xff]  ;;  %v2893_v51 = vpack.c.bf16 %v941_v42, %v933_v41  ;;  %v949_v57 = vld [vmem:[%s5214_s7 + $0xa20] sm:$0xff]  ;;  %v999_v35 = vld [vmem:[%s5214_s7 + $0xbb0] sm:$0xff] }
 0x162   :  { %v960_v50 = vld [vmem:[%s5214_s7 + $0xa78] sm:$0xff]  ;;  %v957_v58 = vld [vmem:[%s5214_s7 + $0xa60] sm:$0xff]  ;;  %v3005_v36 = vpack.c.bf16 %v1008_v31, %v1000_v30  ;;  %v1705_v42 = vld [vmem:[%s5218_s9 + $0x188] sm:$0xff] }
 0x163   :  { %2862 = vmatpush1.bf16.msra.mxu0 %v2861_v4  ;;  %v2977_v4 = vpack.c.bf16 %v896_v60, %v888_v59  ;;  %v951_v59 = vld [vmem:[%s5214_s7 + $0xa30] sm:$0xff]  ;;  %v2993_v60 = vpack.c.bf16 %v960_v50, %v952_v49  ;;  %v1704_v41 = vld [vmem:[%s5218_s9 + $0x180] sm:$0xff]  ;;  %v1695_v30 = vld [vmem:[%s5218_s9 + $0x138] sm:$0xff] }
 0x164   :  { %2960 = vmatpush1.bf16.msra.mxu1 %v2959_v5  ;;  %2864 = vmatprep.subr.bf16.mxu0 %v2863_v6  ;;  %v895_v5 = vld [vmem:[%s5214_s7 + $0x870] sm:$0xff]  ;;  %v902_v6 = vld [vmem:[%s5214_s7 + $0x8a8] sm:$0xff]  ;;  %v1688_v49 = vld [vmem:[%s5218_s9 + $0x100] sm:$0xff]  ;;  %v3043_v50 = vpack.c.bf16 %v1705_v42, %v1704_v41 }
 0x165   :  { %2962 = vmatprep.subr.bf16.mxu1 %v2961_v12  ;;  %v2881_v12 = vpack.c.bf16 %v893_v2, %v885_v1  ;;  %v2979_v13 = vpack.c.bf16 %v895_v5, %v887_v3  ;;  %v2883_v14 = vpack.c.bf16 %v910_v7, %v902_v6  ;;  %v968_v1 = vld [vmem:[%s5214_s7 + $0xab8] sm:$0xff]  ;;  %v2897_v3 = vpack.c.bf16 %v957_v58, %v949_v57  ;;  %v965_v6 = vld [vmem:[%s5214_s7 + $0xaa0] sm:$0xff]  ;;  %v1706_v57 = vld [vmem:[%s5218_s9 + $0x190] sm:$0xff] }
 0x166   :  { %v976_v2 = vld [vmem:[%s5214_s7 + $0xaf8] sm:$0xff]  ;;  %v973_v7 = vld [vmem:[%s5214_s7 + $0xae0] sm:$0xff]  ;;  %v1697_v41 = vld [vmem:[%s5218_s9 + $0x148] sm:$0xff] }
 0x167   :  { %2866 = vmatpush1.bf16.msra.mxu0 %v2865_v18  ;;  %v2981_v18 = vpack.c.bf16 %v912_v11, %v904_v10  ;;  %v967_v10 = vld [vmem:[%s5214_s7 + $0xab0] sm:$0xff]  ;;  %v2997_v11 = vpack.c.bf16 %v976_v2, %v968_v1  ;;  %v1707_v58 = vld [vmem:[%s5218_s9 + $0x198] sm:$0xff]  ;;  %v1680_v31 = vld [vmem:[%s5218_s9 + $0xc0] sm:$0xff] }
 0x168   :  { %2964 = vmatpush1.bf16.msra.mxu1 %v2963_v19  ;;  %2868 = vmatprep.subr.bf16.mxu0 %v2867_v28  ;;  %v911_v19 = vld [vmem:[%s5214_s7 + $0x8f0] sm:$0xff]  ;;  %v918_v28 = vld [vmem:[%s5214_s7 + $0x928] sm:$0xff]  ;;  %v3047_v2 = vpack.c.bf16 %v1707_v58, %v1706_v57  ;;  %v1699_v57 = vld [vmem:[%s5218_s9 + $0x158] sm:$0xff] }
 0x169   :  { %2966 = vmatprep.subr.bf16.mxu1 %v2965_v24  ;;  %v2885_v24 = vpack.c.bf16 %v909_v16, %v901_v15  ;;  %v2983_v25 = vpack.c.bf16 %v911_v19, %v903_v17  ;;  %v2887_v26 = vpack.c.bf16 %v926_v20, %v918_v28  ;;  %v984_v15 = vld [vmem:[%s5214_s7 + $0xb38] sm:$0xff]  ;;  %v2901_v17 = vpack.c.bf16 %v973_v7, %v965_v6  ;;  %v981_v28 = vld [vmem:[%s5214_s7 + $0xb20] sm:$0xff]  ;;  %v1690_v1 = vld [vmem:[%s5218_s9 + $0x110] sm:$0xff] }
 0x16a   :  { %v992_v16 = vld [vmem:[%s5214_s7 + $0xb78] sm:$0xff]  ;;  %v989_v20 = vld [vmem:[%s5214_s7 + $0xb60] sm:$0xff]  ;;  %v1709_v6 = vld [vmem:[%s5218_s9 + $0x1a8] sm:$0xff] }
 0x16b   :  { %2870 = vmatpush1.bf16.msra.mxu0 %v2869_v53  ;;  %v927_v53 = vld [vmem:[%s5214_s7 + $0x970] sm:$0xff]  ;;  %v1684_v58 = vld [vmem:[%s5218_s9 + $0xe0] sm:$0xff] }
 0x16c   :  { %2968 = vmatpush1.bf16.msra.mxu1 %v2967_v33  ;;  %2872 = vmatprep.subr.bf16.mxu0 %v2871_v34  ;;  %v934_v33 = vld [vmem:[%s5214_s7 + $0x9a8] sm:$0xff]  ;;  %v1682_v42 = vld [vmem:[%s5218_s9 + $0xd0] sm:$0xff] }
 0x16d   :  { %2970 = vmatprep.subr.bf16.mxu1 %v2969_v38  ;;  %v942_v34 = vld [vmem:[%s5214_s7 + $0x9e8] sm:$0xff]  ;;  %v2987_v38 = vpack.c.bf16 %v927_v53, %v919_v32  ;;  %v2905_v32 = vpack.c.bf16 %v989_v20, %v981_v28 }
 0x16e   :  { %v2891_v40 = vpack.c.bf16 %v942_v34, %v934_v33  ;;  %v997_v33 = vld [vmem:[%s5214_s7 + $0xba0] sm:$0xff] }
 0x16f   :  { %2874 = vmatpush1.bf16.msra.mxu0 %v2873_v45  ;;  %v943_v45 = vld [vmem:[%s5214_s7 + $0x9f0] sm:$0xff]  ;;  %v1005_v34 = vld [vmem:[%s5214_s7 + $0xbe0] sm:$0x3] }
 0x170   :  { %2972 = vmatpush1.bf16.msra.mxu1 %v2971_v47  ;;  %2876 = vmatprep.subr.bf16.mxu0 %v2875_v48  ;;  %v950_v47 = vld [vmem:[%s5214_s7 + $0xa28] sm:$0xff] }
 0x171   :  { %2974 = vmatprep.subr.bf16.mxu1 %v2973_v55  ;;  %v958_v48 = vld [vmem:[%s5214_s7 + $0xa68] sm:$0xff]  ;;  %v2991_v55 = vpack.c.bf16 %v943_v45, %v935_v43  ;;  %v2910_v43 = vpack.c.bf16 %v1005_v34, %v997_v33 }
 0x172   :  { %v2895_v56 = vpack.c.bf16 %v958_v48, %v950_v47  ;;  %v1656_v47 = vld [vmem:[%s5218_s9] sm:$0xff]  ;;  %v1657_v48 = vld [vmem:[%s5218_s9 + $0x8] sm:$0xff] }
 0x173   :  { %2878 = vmatpush1.bf16.msra.mxu0 %v2877_v61  ;;  %v959_v61 = vld [vmem:[%s5214_s7 + $0xa70] sm:$0xff] }
 0x174   :  { %2976 = vmatpush1.bf16.msra.mxu1 %v2975_v46  ;;  %2880 = vmatprep.subr.bf16.mxu0 %v2879_v63  ;;  %v966_v46 = vld [vmem:[%s5214_s7 + $0xaa8] sm:$0xff] }
 0x175   :  { %2978 = vmatprep.subr.bf16.mxu1 %v2977_v4  ;;  %v974_v63 = vld [vmem:[%s5214_s7 + $0xae8] sm:$0xff]  ;;  %v2995_v4 = vpack.c.bf16 %v959_v61, %v951_v59  ;;  %v3013_v59 = vpack.c.bf16 %v1657_v48, %v1656_v47 }
 0x176   :  { %1429 = vmatmul.mubr.f32.vlgmr.msra.gmra.mrb[4].mxu0 %v4007_v52  ;;  %v2899_v5 = vpack.c.bf16 %v974_v63, %v966_v46  ;;  %v1658_v46 = vld [vmem:[%s5218_s9 + $0x10] sm:$0xff]  ;;  %v1659_v63 = vld [vmem:[%s5218_s9 + $0x18] sm:$0xff] }
 0x177   :  { %1571 = vmatmul.mubr.f32.vlgmr.msra.gmra.mrb[10].mxu1 %v4007_v52  ;;  %2882 = vmatpush1.bf16.msra.mxu0 %v2881_v12  ;;  %v2985_v52 = vpack.c.bf16 %v928_v23, %v920_v22  ;;  %v975_v12 = vld [vmem:[%s5214_s7 + $0xaf0] sm:$0xff]  ;;  %v3001_v23 = vpack.c.bf16 %v992_v16, %v984_v15  ;;  %v3017_v7 = vpack.c.bf16 %v1659_v63, %v1658_v46  ;;  %v1693_v15 = vld [vmem:[%s5218_s9 + $0x128] sm:$0xff] }
 0x178   :  { %2980 = vmatpush1.bf16.msra.mxu1 %v2979_v13  ;;  %2884 = vmatprep.subr.bf16.mxu0 %v2883_v14  ;;  %v982_v13 = vld [vmem:[%s5214_s7 + $0xb28] sm:$0xff]  ;;  %v983_v22 = vld [vmem:[%s5214_s7 + $0xb30] sm:$0xff] }
 0x179   :  { %2982 = vmatprep.subr.bf16.mxu1 %v2981_v18  ;;  %1499 = vmatprep.mubr.f32.mxu0 %v3179_v8  ;;  %v990_v14 = vld [vmem:[%s5214_s7 + $0xb68] sm:$0xff]  ;;  %v2999_v18 = vpack.c.bf16 %v975_v12, %v967_v10  ;;  %v3049_v10 = vpack.c.bf16 %v1691_v9, %v1690_v1  ;;  %v1660_v12 = vld [vmem:[%s5218_s9 + $0x20] sm:$0xff]  ;;  %v1678_v16 = vld [vmem:[%s5218_s9 + $0xb0] sm:$0xff] }
 0x17a   :  { %1641 = vmatprep.mubr.f32.mxu1 %v3179_v8  ;;  %v2903_v19 = vpack.c.bf16 %v990_v14, %v982_v13  ;;  %v1661_v13 = vld [vmem:[%s5218_s9 + $0x28] sm:$0xff]  ;;  %v1692_v14 = vld [vmem:[%s5218_s9 + $0x120] sm:$0xff] }
 0x17b   :  { %2886 = vmatpush1.bf16.msra.mxu0 %v2885_v24  ;;  %v991_v24 = vld [vmem:[%s5214_s7 + $0xb70] sm:$0xff]  ;;  %v3021_v28 = vpack.c.bf16 %v1661_v13, %v1660_v12  ;;  %v3053_v20 = vpack.c.bf16 %v1693_v15, %v1692_v14  ;;  %v1669_v9 = vld [vmem:[%s5218_s9 + $0x68] sm:$0xff]  ;;  %v1671_v15 = vld [vmem:[%s5218_s9 + $0x78] sm:$0xff] }
 0x17c   :  { %2984 = vmatpush1.bf16.msra.mxu1 %v2983_v25  ;;  %2888 = vmatprep.subr.bf16.mxu0 %v2887_v26  ;;  %v998_v25 = vld [vmem:[%s5214_s7 + $0xba8] sm:$0xff] }
 0x17d   :  { %2986 = vmatprep.subr.bf16.mxu1 %v2985_v52  ;;  %v1006_v26 = vld [vmem:[%s5214_s7 + $0xbe8] sm:$0x3]  ;;  %v3003_v52 = vpack.c.bf16 %v991_v24, %v983_v22  ;;  %v1663_v24 = vld [vmem:[%s5218_s9 + $0x38] sm:$0xff] }
 0x17e   :  { %v2907_v53 = vpack.c.bf16 %v1006_v26, %v998_v25  ;;  %v1694_v25 = vld [vmem:[%s5218_s9 + $0x130] sm:$0xff] }
 0x17f   :  { %2890 = vmatpush1.bf16.msra.mxu0 %v2889_v37  ;;  %v1007_v37 = vld [vmem:[%s5214_s7 + $0xbf0] sm:$0x3]  ;;  %v3057_v34 = vpack.c.bf16 %v1695_v30, %v1694_v25  ;;  %v1025_v25 = vsub.s32 3, %v3959_v21 }
 0x180   :  { %2988 = vmatpush1.bf16.msra.mxu1 %v2987_v38  ;;  %2892 = vmatprep.subr.bf16.mxu0 %v2891_v40  ;;  %v1672_v38 = vld [vmem:[%s5218_s9 + $0x80] sm:$0xff]  ;;  %v1673_v40 = vld [vmem:[%s5218_s9 + $0x88] sm:$0xff] }
 0x181   :  { %2990 = vmatprep.subr.bf16.mxu1 %v2989_v44  ;;  %v3008_v44 = vpack.c.bf16 %v1007_v37, %v999_v35  ;;  %v3011_v45 = vpack.c.bf16 %v1673_v40, %v1672_v38  ;;  %v1665_v37 = vld [vmem:[%s5218_s9 + $0x48] sm:$0xff]  ;;  %v1696_v38 = vld [vmem:[%s5218_s9 + $0x140] sm:$0xff] }
 0x182   :  { %v3061_v48 = vpack.c.bf16 %v1697_v41, %v1696_v38  ;;  %v1721_v38 = vld [vmem:[%s5218_s9 + $0x208] sm:$0xff] }
 0x183   :  { %2894 = vmatpush1.bf16.msra.mxu0 %v2893_v51  ;;  %v1689_v51 = vld [vmem:[%s5218_s9 + $0x108] sm:$0xff] }
 0x184   :  { %2992 = vmatpush1.bf16.msra.mxu1 %v2991_v55  ;;  %2896 = vmatprep.subr.bf16.mxu0 %v2895_v56  ;;  %v1674_v55 = vld [vmem:[%s5218_s9 + $0x90] sm:$0xff]  ;;  %v1675_v56 = vld [vmem:[%s5218_s9 + $0x98] sm:$0xff] }
 0x185   :  { %2994 = vmatprep.subr.bf16.mxu1 %v2993_v60  ;;  %v3045_v60 = vpack.c.bf16 %v1689_v51, %v1688_v49  ;;  %v3015_v61 = vpack.c.bf16 %v1675_v56, %v1674_v55  ;;  %v1667_v51 = vld [vmem:[%s5218_s9 + $0x58] sm:$0xff]  ;;  %v1698_v55 = vld [vmem:[%s5218_s9 + $0x150] sm:$0xff] }
 0x186   :  { %v3065_v63 = vpack.c.bf16 %v1699_v57, %v1698_v55  ;;  %v1755_v55 = vld [vmem:[%s5218_s9 + $0x318] sm:$0xff]  ;;  %v1722_v57 = vld [vmem:[%s5218_s9 + $0x210] sm:$0xff] }
 0x187   :  { %2898 = vmatpush1.bf16.msra.mxu0 %v2897_v3  ;;  %v1676_v3 = vld [vmem:[%s5218_s9 + $0xa0] sm:$0xff] }
 0x188   :  { %2996 = vmatpush1.bf16.msra.mxu1 %v2995_v4  ;;  %2900 = vmatprep.subr.bf16.mxu0 %v2899_v5  ;;  %v1677_v4 = vld [vmem:[%s5218_s9 + $0xa8] sm:$0xff]  ;;  %v1708_v5 = vld [vmem:[%s5218_s9 + $0x1a0] sm:$0xff] }
 0x189   :  { %2998 = vmatprep.subr.bf16.mxu1 %v2997_v11  ;;  %v3019_v11 = vpack.c.bf16 %v1677_v4, %v1676_v3  ;;  %v1700_v3 = vld [vmem:[%s5218_s9 + $0x160] sm:$0xff] }
 0x18b   :  { %2902 = vmatpush1.bf16.msra.mxu0 %v2901_v17  ;;  %v1679_v17 = vld [vmem:[%s5218_s9 + $0xb8] sm:$0xff] }
 0x18c   :  { %3000 = vmatpush1.bf16.msra.mxu1 %v2999_v18  ;;  %2904 = vmatprep.subr.bf16.mxu0 %v2903_v19  ;;  %v1710_v18 = vld [vmem:[%s5218_s9 + $0x1b0] sm:$0xff]  ;;  %v1711_v19 = vld [vmem:[%s5218_s9 + $0x1b8] sm:$0xff]  ;;  %v3023_v22 = vpack.c.bf16 %v1679_v17, %v1678_v16 }
 0x18d   :  { %3002 = vmatprep.subr.bf16.mxu1 %v3001_v23  ;;  %v1662_v23 = vld [vmem:[%s5218_s9 + $0x30] sm:$0xff]  ;;  %v3055_v26 = vpack.c.bf16 %v1711_v19, %v1710_v18  ;;  %v1703_v18 = vld [vmem:[%s5218_s9 + $0x178] sm:$0xff]  ;;  %v1736_v19 = vld [vmem:[%s5218_s9 + $0x280] sm:$0xff] }
 0x18e   :  { %v3025_v33 = vpack.c.bf16 %v1663_v24, %v1662_v23  ;;  %v1702_v16 = vld [vmem:[%s5218_s9 + $0x170] sm:$0xff]  ;;  %v4987_v24 = vld [vmem:[%s5219_s8] sm:$0xff] }
 0x18f   :  { %2906 = vmatpush1.bf16.msra.mxu0 %v2905_v32  ;;  %v1681_v32 = vld [vmem:[%s5218_s9 + $0xc8] sm:$0xff]  ;;  %v1022_v30 = vrot.slane %v4987_v24, %v614_v62 }
 0x190   :  { %3004 = vmatpush1.bf16.msra.mxu1 %v3003_v52  ;;  %2909 = vmatprep.subr.msk.bf16.mxu0 %vm4157_vm8, %v2907_v53  ;;  %v1712_v52 = vld [vmem:[%s5218_s9 + $0x1c0] sm:$0xff]  ;;  %v1713_v53 = vld [vmem:[%s5218_s9 + $0x1c8] sm:$0xff]  ;;  %v3027_v35 = vpack.c.bf16 %v1681_v32, %v1680_v31  ;;  %v1018_v31 = vrot.slane %v4987_v24, %v610_v29  ;;  %v1026_v32 = vrot.slane %v4987_v24, %v1025_v25  ;;  %v1747_v25 = vld [vmem:[%s5218_s9 + $0x2d8] sm:$0xff] }
 0x191   :  { %3007 = vmatprep.subr.msk.bf16.mxu1 %vm4157_vm8, %v3005_v36  ;;  %v1664_v36 = vld [vmem:[%s5218_s9 + $0x40] sm:$0xff]  ;;  %v3059_v40 = vpack.c.bf16 %v1713_v53, %v1712_v52  ;;  %v1753_v62 = vld [vmem:[%s5218_s9 + $0x308] sm:$0xff] }
 0x192   :  { %v3029_v47 = vpack.c.bf16 %v1665_v37, %v1664_v36  ;;  %v1720_v29 = vld [vmem:[%s5218_s9 + $0x200] sm:$0xff] }
 0x193   :  { %2912 = vmatpush1.bf16.msk.msra.mxu0 %vm4157_vm8, %v2910_v43  ;;  %v1683_v43 = vld [vmem:[%s5218_s9 + $0xd8] sm:$0xff] }
 0x194   :  { %3010 = vmatpush1.bf16.msk.msra.mxu1 %vm4157_vm8, %v3008_v44  ;;  %3012 = vmatprep.subr.bf16.mxu0 %v3011_v45  ;;  %v1714_v44 = vld [vmem:[%s5218_s9 + $0x1d0] sm:$0xff]  ;;  %v1715_v45 = vld [vmem:[%s5218_s9 + $0x1d8] sm:$0xff]  ;;  %v3031_v49 = vpack.c.bf16 %v1683_v43, %v1682_v42 }
 0x195   :  { %3044 = vmatprep.subr.bf16.mxu1 %v3043_v50  ;;  %v1666_v50 = vld [vmem:[%s5218_s9 + $0x50] sm:$0xff]  ;;  %v3063_v56 = vpack.c.bf16 %v1715_v45, %v1714_v44  ;;  %v1739_v43 = vld [vmem:[%s5218_s9 + $0x298] sm:$0xff] }
 0x196   :  { %2278 = vmatmul.mubr.msk.f32.vlgmr.msra.gmra.mrb[4].mxu0 %vm1051_vm9, %v4221_v39  ;;  %v3033_v46 = vpack.c.bf16 %v1667_v51, %v1666_v50  ;;  %v1738_v42 = vld [vmem:[%s5218_s9 + $0x290] sm:$0xff] }
 0x197   :  { %2281 = vmatmul.mubr.msk.f32.vlgmr.msra.gmra.mrb[10].mxu1 %vm1051_vm9, %v4221_v39  ;;  %3014 = vmatpush3.bf16.msra.mxu0 %v3013_v59  ;;  %v3051_v39 = vpack.c.bf16 %v1709_v6, %v1708_v5  ;;  %v1685_v59 = vld [vmem:[%s5218_s9 + $0xe8] sm:$0xff]  ;;  %v1686_v6 = vld [vmem:[%s5218_s9 + $0xf0] sm:$0xff] }
 0x198   :  { %3046 = vmatpush3.bf16.msra.mxu1 %v3045_v60  ;;  %3016 = vmatprep.subr.bf16.mxu0 %v3015_v61  ;;  %v1716_v60 = vld [vmem:[%s5218_s9 + $0x1e0] sm:$0xff]  ;;  %v1717_v61 = vld [vmem:[%s5218_s9 + $0x1e8] sm:$0xff]  ;;  %v3035_v1 = vpack.c.bf16 %v1685_v59, %v1684_v58  ;;  %v1723_v58 = vld [vmem:[%s5218_s9 + $0x218] sm:$0xff] }
 0x199   :  { %3048 = vmatprep.subr.bf16.mxu1 %v3047_v2  ;;  %v1668_v2 = vld [vmem:[%s5218_s9 + $0x60] sm:$0xff]  ;;  %v3067_v4 = vpack.c.bf16 %v1717_v61, %v1716_v60  ;;  %v1701_v5 = vld [vmem:[%s5218_s9 + $0x168] sm:$0xff] }
 0x19a   :  { %v3037_v12 = vpack.c.bf16 %v1669_v9, %v1668_v2  ;;  %v3069_v13 = vpack.c.bf16 %v1701_v5, %v1700_v3  ;;  %v1740_v59 = vld [vmem:[%s5218_s9 + $0x2a0] sm:$0xff]  ;;  %v1741_v60 = vld [vmem:[%s5218_s9 + $0x2a8] sm:$0xff]  ;;  %v1743_v5 = vld [vmem:[%s5218_s9 + $0x2b8] sm:$0xff] }
 0x19b   :  { %3018 = vmatpush3.bf16.msra.mxu0 %v3017_v7  ;;  %v1687_v7 = vld [vmem:[%s5218_s9 + $0xf8] sm:$0xff]  ;;  %v3083_v2 = vpack.c.bf16 %v1741_v60, %v1740_v59  ;;  %v1724_v9 = vld [vmem:[%s5218_s9 + $0x220] sm:$0xff]  ;;  %v1725_v3 = vld [vmem:[%s5218_s9 + $0x228] sm:$0xff]  ;;  %v1029_v60 = vsub.s32 4, %v3959_v21 }
 0x19c   :  { %3050 = vmatpush3.bf16.msra.mxu1 %v3049_v10  ;;  %3020 = vmatprep.subr.bf16.mxu0 %v3019_v11  ;;  %v1718_v10 = vld [vmem:[%s5218_s9 + $0x1f0] sm:$0xff]  ;;  %v1719_v11 = vld [vmem:[%s5218_s9 + $0x1f8] sm:$0xff]  ;;  %v3039_v14 = vpack.c.bf16 %v1687_v7, %v1686_v6  ;;  %v3085_v7 = vpack.c.bf16 %v1725_v3, %v1724_v9 }
 0x19d   :  { %3052 = vmatprep.subr.bf16.mxu1 %v3051_v39  ;;  %v1670_v39 = vld [vmem:[%s5218_s9 + $0x70] sm:$0xff]  ;;  %v3071_v17 = vpack.c.bf16 %v1719_v11, %v1718_v10  ;;  %v1759_v11 = vld [vmem:[%s5218_s9 + $0x338] sm:$0xff] }
 0x19e   :  { %v1758_v10 = vld [vmem:[%s5218_s9 + $0x330] sm:$0xff] }
 0x19f   :  { %3022 = vmatpush3.bf16.msra.mxu0 %v3021_v28  ;;  %v1737_v28 = vld [vmem:[%s5218_s9 + $0x288] sm:$0xff] }
 0x1a0   :  { %3054 = vmatpush3.bf16.msra.mxu1 %v3053_v20  ;;  %3024 = vmatprep.subr.bf16.mxu0 %v3023_v22  ;;  %v3041_v20 = vpack.c.bf16 %v1671_v15, %v1670_v39  ;;  %v3073_v22 = vpack.c.bf16 %v1703_v18, %v1702_v16  ;;  %v3075_v23 = vpack.c.bf16 %v1737_v28, %v1736_v19  ;;  %v1744_v39 = vld [vmem:[%s5218_s9 + $0x2c0] sm:$0xff]  ;;  %v1745_v15 = vld [vmem:[%s5218_s9 + $0x2c8] sm:$0xff] }
 0x1a1   :  { %3056 = vmatprep.subr.bf16.mxu1 %v3055_v26  ;;  %v1014_v26 = vrot.slane %v4987_v24, %v3962_v27  ;;  %v3117_v16 = vpack.c.bf16 %v1759_v11, %v1758_v10  ;;  %v1760_v18 = vld [vmem:[%s5218_s9 + $0x340] sm:$0xff]  ;;  %v1761_v19 = vld [vmem:[%s5218_s9 + $0x348] sm:$0xff]  ;;  %v3091_v28 = vpack.c.bf16 %v1745_v15, %v1744_v39 }
 0x1a2   :  { %v2062_v10 = vld [vmem:[%s5220_s11] sm:$0xff] }
 0x1a3   :  { %3026 = vmatpush3.bf16.msra.mxu0 %v3025_v33  ;;  %v1752_v33 = vld [vmem:[%s5218_s9 + $0x300] sm:$0xff] }
 0x1a4   :  { %3058 = vmatpush3.bf16.msra.mxu1 %v3057_v34  ;;  %3028 = vmatprep.subr.bf16.mxu0 %v3027_v35 }
 0x1a5   :  { %3060 = vmatprep.subr.bf16.mxu1 %v3059_v40 }
 0x1a7   :  { %3030 = vmatpush3.bf16.msra.mxu0 %v3029_v47  ;;  %v3108_v47 = vpack.c.bf16 %v1753_v62, %v1752_v33  ;;  %v1731_v33 = vld [vmem:[%s5218_s9 + $0x258] sm:$0xff]  ;;  %v1764_v62 = vld [vmem:[%s5218_s9 + $0x360] sm:$0xff] }
 0x1a8   :  { %3062 = vmatpush3.bf16.msra.mxu1 %v3061_v48  ;;  %3032 = vmatprep.subr.bf16.mxu0 %v3031_v49  ;;  %v3077_v48 = vpack.c.bf16 %v1721_v38, %v1720_v29  ;;  %v1754_v49 = vld [vmem:[%s5218_s9 + $0x310] sm:$0xff]  ;;  %v1765_v29 = vld [vmem:[%s5218_s9 + $0x368] sm:$0xff] }
 0x1a9   :  { %3064 = vmatprep.subr.bf16.mxu1 %v3063_v56  ;;  %v3079_v56 = vpack.c.bf16 %v1739_v43, %v1738_v42  ;;  %v3111_v61 = vpack.c.bf16 %v1755_v55, %v1754_v49  ;;  %v1750_v42 = vld [vmem:[%s5218_s9 + $0x2f0] sm:$0xff]  ;;  %v1751_v43 = vld [vmem:[%s5218_s9 + $0x2f8] sm:$0xff] }
 0x1aa   :  { %v3103_v49 = vpack.c.bf16 %v1751_v43, %v1750_v42  ;;  %v3181_v42 = vmov 0   ;;  %v20_v43 = vstv %s5222_s14 }
 0x1ab   :  { %3034 = vmatpush3.bf16.msra.mxu0 %v3033_v46  ;;  %v3081_v46 = vpack.c.bf16 %v1723_v58, %v1722_v57  ;;  %v1768_v57 = vld [vmem:[%s5218_s9 + $0x380] sm:$0xff]  ;;  %v1769_v58 = vld [vmem:[%s5218_s9 + $0x388] sm:$0xff]  ;;  %3172 = vset.pattern.permute.xlu0 %v3181_v42  ;;  %21 = vst [vmem:[#allocation2] sm:$0x1] %v20_v43 }
 0x1ac   :  { %3066 = vmatpush3.bf16.msra.mxu1 %v3065_v63  ;;  %3036 = vmatprep.subr.bf16.mxu0 %v3035_v1  ;;  %v1756_v63 = vld [vmem:[%s5218_s9 + $0x320] sm:$0xff]  ;;  %v1757_v1 = vld [vmem:[%s5218_s9 + $0x328] sm:$0xff]  ;;  %v3132_v59 = vpack.c.bf16 %v1769_v58, %v1768_v57 }
 0x1ad   :  { %3068 = vmatprep.subr.bf16.mxu1 %v3067_v4  ;;  %v1742_v4 = vld [vmem:[%s5218_s9 + $0x2b0] sm:$0xff]  ;;  %v3114_v6 = vpack.c.bf16 %v1757_v1, %v1756_v63  ;;  %v1041_v63 = vsub.s32 7, %v3959_v21  ;;  %v1030_v1 = vrot.slane %v4987_v24, %v1029_v60 }
 0x1af   :  { %3038 = vmatpush3.bf16.msra.mxu0 %v3037_v12  ;;  %v3087_v12 = vpack.c.bf16 %v1743_v5, %v1742_v4  ;;  %v1042_v3 = vrot.slane %v4987_v24, %v1041_v63 }
 0x1b0   :  { %3070 = vmatpush3.bf16.msra.mxu1 %v3069_v13  ;;  %3040 = vmatprep.subr.bf16.mxu0 %v3039_v14  ;;  %v1726_v13 = vld [vmem:[%s5218_s9 + $0x230] sm:$0xff]  ;;  %v1727_v14 = vld [vmem:[%s5218_s9 + $0x238] sm:$0xff] }
 0x1b1   :  { %3072 = vmatprep.subr.bf16.mxu1 %v3071_v17  ;;  %v3089_v17 = vpack.c.bf16 %v1727_v14, %v1726_v13 }
 0x1b3   :  { %3042 = vmatpush3.bf16.msra.mxu0 %v3041_v20  ;;  %v1728_v20 = vld [vmem:[%s5218_s9 + $0x240] sm:$0xff] }
 0x1b4   :  { %3074 = vmatpush3.bf16.msra.mxu1 %v3073_v22  ;;  %3076 = vmatprep.subr.bf16.mxu0 %v3075_v23  ;;  %v1729_v22 = vld [vmem:[%s5218_s9 + $0x248] sm:$0xff]  ;;  %v1746_v23 = vld [vmem:[%s5218_s9 + $0x2d0] sm:$0xff] }
 0x1b5   :  { %3107 = vmatprep.subr.bf16.mxu1 %v3177_v0 }
 0x209   :  { %v1217_v52 = vpop.f32.mrb[2].mxu0  ;;  %v1359_v53 = vpop.f32.mrb[8].mxu1 }
 0x20a   :  { %v3149_v34 = vadd.f32 %v1217_v52, %v1014_v26  ;;  %v3151_v35 = vadd.f32 %v1359_v53, %v1022_v30  ;;  %v1219_v36 = vpop.f32.mrb[3].mxu0  ;;  %v1361_v37 = vpop.f32.mrb[9].mxu1  ;;  %v3120_v26 = vpack.c.bf16 %v1761_v19, %v1760_v18  ;;  %v3093_v30 = vpack.c.bf16 %v1729_v22, %v1728_v20  ;;  %v1730_v53 = vld [vmem:[%s5218_s9 + $0x250] sm:$0xff]  ;;  %v2065_v18 = vld [vmem:[%s5220_s11 + $0x18] sm:$0xff]  ;;  %v2066_v20 = vld [vmem:[%s5220_s11 + $0x20] sm:$0xff] }
 0x20b   :  { %v3150_v40 = vadd.f32 %v1219_v36, %v1018_v31  ;;  %v3152_v41 = vadd.f32 %v1361_v37, %v1026_v32  ;;  %v1762_v31 = vld [vmem:[%s5218_s9 + $0x350] sm:$0xff]  ;;  %v1763_v32 = vld [vmem:[%s5218_s9 + $0x358] sm:$0xff]  ;;  %v3095_v52 = vpack.c.bf16 %v1747_v25, %v1746_v23  ;;  %v3097_v37 = vpack.c.bf16 %v1731_v33, %v1730_v53  ;;  %v2067_v22 = vld [vmem:[%s5220_s11 + $0x28] sm:$0xff] }
 0x20c   :  { %v1648_v50 = vmax.f32 %v3149_v34, 0.0  ;;  %v1650_v51 = vmax.f32 %v3151_v35, 0.0  ;;  %v1748_v34 = vld [vmem:[%s5218_s9 + $0x2e0] sm:$0xff]  ;;  %v1749_v35 = vld [vmem:[%s5218_s9 + $0x2e8] sm:$0xff]  ;;  %v3123_v36 = vpack.c.bf16 %v1763_v32, %v1762_v31  ;;  %v3141_v23 = vpack.c.bf16 %v2067_v22, %v2066_v20  ;;  %v2068_v25 = vld [vmem:[%s5220_s11 + $0x30] sm:$0xff] }
 0x20d   :  { %v1649_v44 = vmax.f32 %v3150_v40, 0.0  ;;  %v1651_v45 = vmax.f32 %v3152_v41, 0.0  ;;  %v3099_v38 = vpack.c.bf16 %v1749_v35, %v1748_v34  ;;  %v1732_v40 = vld [vmem:[%s5218_s9 + $0x260] sm:$0xff]  ;;  %v1733_v41 = vld [vmem:[%s5218_s9 + $0x268] sm:$0xff] }
 0x20e   :  { %v2282_v32 = vld [vmem:[%s5221_s10] ss:$0 sm:$0xff] }
 0x20f   :  { %1845 = vmatprep.mubr.f32.mxu0 %v1649_v44  ;;  %1915 = vmatprep.mubr.f32.mxu1 %v1651_v45  ;;  %v3126_v44 = vpack.c.bf16 %v1765_v29, %v1764_v62  ;;  %v3101_v45 = vpack.c.bf16 %v1733_v41, %v1732_v40 }
 0x210   :  { %1846 = vmatmul.mubr.f32.vlgmr.msra.gmra.mrb[6].mxu0 %v1648_v50  ;;  %1916 = vmatmul.mubr.f32.vlgmr.msra.gmra.mrb[12].mxu1 %v1650_v51  ;;  %v1734_v50 = vld [vmem:[%s5218_s9 + $0x270] sm:$0xff]  ;;  %v1735_v51 = vld [vmem:[%s5218_s9 + $0x278] sm:$0xff] }
 0x211   :  { %3109 = vmatpush1.bf16.msra.mxu1 %v3108_v47  ;;  %3078 = vmatpush3.bf16.msra.mxu0 %v3077_v48  ;;  %v1766_v47 = vld [vmem:[%s5218_s9 + $0x370] sm:$0xff]  ;;  %v1767_v48 = vld [vmem:[%s5218_s9 + $0x378] sm:$0xff] }
 0x212   :  { %3110 = vmatprep.subr.bf16.mxu1 %v3177_v0  ;;  %3080 = vmatprep.subr.bf16.mxu0 %v3079_v56  ;;  %v3129_v55 = vpack.c.bf16 %v1767_v48, %v1766_v47  ;;  %v3105_v56 = vpack.c.bf16 %v1735_v51, %v1734_v50  ;;  %v2155_v51 = vld [vmem:[%s5224_s13] sm:$0x1] }
 0x215   :  { %3112 = vmatpush1.bf16.msra.mxu1 %v3111_v61  ;;  %3082 = vmatpush3.bf16.msra.mxu0 %v3081_v46  ;;  %v1037_v61 = vsub.s32 6, %v3959_v21  ;;  %v1033_v46 = vsub.s32 5, %v3959_v21  ;;  %v2063_v21 = vld [vmem:[%s5220_s11 + $0x8] sm:$0xff] }
 0x216   :  { %3113 = vmatprep.subr.bf16.mxu1 %v3177_v0  ;;  %3084 = vmatprep.subr.bf16.mxu0 %v3083_v2  ;;  %v3135_v15 = vpack.c.bf16 %v2063_v21, %v2062_v10 }
 0x217   :  { %v1038_v2 = vrot.slane %v4987_v24, %v1037_v61  ;;  %v1034_v9 = vrot.slane %v4987_v24, %v1033_v46 }
 0x219   :  { %3115 = vmatpush1.bf16.msra.mxu1 %v3114_v6  ;;  %3086 = vmatpush3.bf16.msra.mxu0 %v3085_v7 }
 0x21a   :  { %3116 = vmatprep.subr.bf16.mxu1 %v3177_v0  ;;  %3088 = vmatprep.subr.bf16.mxu0 %v3087_v12 }
 0x21d   :  { %3118 = vmatpush1.bf16.msra.mxu1 %v3117_v16  ;;  %3090 = vmatpush3.bf16.msra.mxu0 %v3089_v17  ;;  %v2064_v17 = vld [vmem:[%s5220_s11 + $0x10] sm:$0xff] }
 0x21e   :  { %3119 = vmatprep.subr.bf16.mxu1 %v3177_v0  ;;  %3092 = vmatprep.subr.bf16.mxu0 %v3091_v28  ;;  %v3138_v28 = vpack.c.bf16 %v2065_v18, %v2064_v17 }
 0x221   :  { %3121 = vmatpush1.bf16.msra.mxu1 %v3120_v26  ;;  %3094 = vmatpush3.bf16.msra.mxu0 %v3093_v30 }
 0x222   :  { %3122 = vmatprep.subr.bf16.mxu1 %v3177_v0  ;;  %3096 = vmatprep.subr.bf16.mxu0 %v3095_v52 }
 0x225   :  { %3124 = vmatpush1.bf16.msra.mxu1 %v3123_v36  ;;  %3098 = vmatpush3.bf16.msra.mxu0 %v3097_v37 }
 0x226   :  { %3125 = vmatprep.subr.bf16.mxu1 %v3177_v0  ;;  %3100 = vmatprep.subr.bf16.mxu0 %v3099_v38 }
 0x229   :  { %3127 = vmatpush1.bf16.msra.mxu1 %v3126_v44  ;;  %3102 = vmatpush3.bf16.msra.mxu0 %v3101_v45  ;;  %v2156_v44 = vld [vmem:[#allocation2] sm:$0x1] }
 0x22a   :  { %3128 = vmatprep.subr.bf16.mxu1 %v3177_v0  ;;  %3104 = vmatprep.subr.bf16.mxu0 %v3103_v49  ;;  %v2284_v45 = vld [vmem:[%s5223_s12] ss:$0 sm:$0xff] }
 0x22b   :  { %2159 = vperm.xlu0 %3172, %v2156_v44  }
 0x22d   :  { %3130 = vmatpush1.bf16.msra.mxu1 %v3129_v55  ;;  %3106 = vmatpush3.bf16.msra.mxu0 %v3105_v56 }
 0x22e   :  { %3131 = vmatprep.subr.bf16.mxu1 %v3177_v0  ;;  %3134 = vmatprep.subr.bf16.mxu0 %v3177_v0 }
 0x231   :  { %3133 = vmatpush1.bf16.msra.mxu1 %v3132_v59 }
 0x232   :  { %2517 = vmatprep.subr.mxu1 %v3179_v8 }
 0x269   :  { %v1501_v4 = vpop.f32.mrb[4].mxu0 }
 0x26a   :  { %v3153_v5 = vadd.f32 %v1501_v4, %v1030_v1  ;;  %v1643_v6 = vpop.f32.mrb[10].mxu1  ;;  %v1503_v7 = vpop.f32.mrb[5].mxu0 }
 0x26b   :  { %v3155_v11 = vadd.f32 %v1643_v6, %v1038_v2  ;;  %v3154_v12 = vadd.f32 %v1503_v7, %v1034_v9  ;;  %v1645_v13 = vpop.f32.mrb[11].mxu1 }
 0x26c   :  { %v3156_v14 = vadd.f32 %v1645_v13, %v1042_v3  ;;  %v1652_v24 = vmax.f32 %v3153_v5, 0.0 }
 0x26d   :  { %v1653_v39 = vmax.f32 %v3154_v12, 0.0  ;;  %v1654_v19 = vmax.f32 %v3155_v11, 0.0 }
 0x26e   :  { %v1655_v16 = vmax.f32 %v3156_v14, 0.0 }
 0x26f   :  { %1985 = vmatprep.mubr.f32.mxu0 %v1653_v39 }
 0x270   :  { %2283 = vmatprep.mubr.msk.f32.mxu1 %vm1777_vm10, %v1655_v16  ;;  %1986 = vmatmul.mubr.f32.vlgmr.msra.gmra.mrb[8].mxu0 %v1652_v24 }
 0x271   :  { %2056 = vmatmul.mubr.f32.vlgmr.msra.gmra.mrb[14].mxu1 %v1654_v19  ;;  %3136 = vmatpush3.bf16.msra.mxu0 %v3135_v15 }
 0x272   :  { %3137 = vmatprep.subr.bf16.mxu0 %v3177_v0  ;;  %2514 = vmatprep.mubr.msk.f32.mxu0 %vm3178_vm0, %v3179_v8 }
 0x273   :  { %2519 = vmatprep.mubr.msk.f32.mxu1 %vm3178_vm0, %v3179_v8  ;;  %v2069_v8 = vld [vmem:[%s5220_s11 + $0x38] sm:$0xf] }
 0x274   :  { %v3144_v26 = vpack.c.bf16 %v2069_v8, %v2068_v25 }
 0x275   :  { %3139 = vmatpush3.bf16.msra.mxu0 %v3138_v28 }
 0x276   :  { %3140 = vmatprep.subr.bf16.mxu0 %v3177_v0 }
 0x279   :  { %3142 = vmatpush3.bf16.msra.mxu0 %v3141_v23 }
 0x27a   :  { %3143 = vmatprep.subr.bf16.mxu0 %v3177_v0 }
 0x27d   :  { %3146 = vmatpush3.bf16.msk.msra.mxu0 %vm3379_vm3, %v3144_v26 }
 0x2aa   :  { %v2160_v55 = vpop.permute.xlu0 %2159 }
 0x2ab   :  { %v2165_v56 = vrot.slane %v2160_v55, %v3962_v27 }
 0x2e3   :  { %v2351_v30 = vpop.f32.mrb[6].mxu0  ;;  %v2386_v31 = vpop.f32.mrb[12].mxu1 }
 0x2e4   :  { %v2352_v52 = vpop.f32.mrb[7].mxu0  ;;  %v2387_v0 = vpop.f32.mrb[13].mxu1 }
 0x2e5   :  { %v2353_v53 = vadd.f32 %v2352_v52, %v2351_v30  ;;  %v2388_v33 = vadd.f32 %v2387_v0, %v2386_v31 }
 0x2e7   :  { %v1848_v34 = vadd.f32 %v2353_v53, %v2282_v32 }
 0x2e9   :  { %v1918_v35 = vadd.f32 %v2388_v33, %v1848_v34 }
 0x343   :  { %v2421_v36 = vpop.f32.mrb[8].mxu0 }
 0x344   :  { %v2057_v37 = vpop.f32.mrb[14].mxu1  ;;  %v2422_v62 = vpop.f32.mrb[9].mxu0 }
 0x345   :  { %v2423_v29 = vadd.f32 %v2422_v62, %v2421_v36  ;;  %v2059_v38 = vpop.f32.mrb[15].mxu1 }
 0x347   :  { %v1988_v40 = vadd.f32 %v2423_v29, %v1918_v35 }
 0x349   :  { %v2058_v54 = vadd.f32 %v2057_v37, %v1988_v40 }
 0x34b   :  { %v2061_v41 = vmax.f32 %v2058_v54, 0.0 }
 0x34d   :  { %2515 = vmatmul.mubr.msk.f32.vlgmr.msra.gmra.mrb[10].mxu0 %vm2077_vm11, %v2061_v41 }
 0x420   :  { %v2150_v47 = vpop.f32.mrb[10].mxu0 }
 0x421   :  { %v2151_v48 = vadd.f32 %v2284_v45, %v2150_v47  ;;  %v2516_v49 = vpop.f32.mrb[11].mxu0 }
 0x423   :  { %v2154_v50 = vmax.f32 %v2151_v48, 0.0 }
 0x425   :  { %2518 = vmatpush3.xpose.msk.msra.mxu1 %vm2166_vm12, %v2154_v50 }
 0x428   :  { %2520 = vmatmul.mubr.msk.f32.vlgmr.msra.gmra.mrb[16].mxu1 %vm2166_vm12, %v2155_v51 }
 0x4fb   :  { %v2239_v57 = vpop.f32.mrb[16].mxu1 }
 0x4fc   :  { %v2240_v58 = vadd.f32 %v2239_v57, %v2165_v56  ;;  %v2521_v59 = vpop.f32.mrb[17].mxu1 }
 0x4fe   :  { %v2243_v60 = vsub.f32 0.0, %v2240_v58 }
 0x500   :  { %v2244_v61 = vmul.f32 1.442695, %v2243_v60 }
 0x502   :  { %3173 = vpow2.f32 %v2244_v61 }
 0x50c   :  { %v3174_v46 = vpop.eup %3173 }
 0x50d   :  { %v2246_v63 = vadd.f32 1.0, %v3174_v46 }
 0x50f   :  { %3175 = vrcp.f32 %v2246_v63 }
 0x519   :  { %v3176_v1 = vpop.eup %3175 }
 0x51a   :  { %2250 = vst.msk [vmem:[%s5225_s15] sm:$0x1] %vm2249_vm13, %v3176_v1 }

</bundles_post_ra>
